<compile_context>
chip_gen: v5e
topology: v5e:2x2
jax: 0.10.0
libtpu: 0.0.40
codegen_flags: <defaults>
</compile_context>

<pallas_src>
import functools

import jax
import jax.numpy as jnp
from jax.experimental import pallas as pl
from jax.experimental.pallas import tpu as pltpu


# ------------------------------------------------------------------
# Fused LEXConv kernel
# ------------------------------------------------------------------

def _lexconv_kernel(x_ref, y_ref, adj_ref,
                    wx_ref, bp1_ref, wp2_ref, bp2_ref,
                    emb01_ref, ws_ref, bs_ref,
                    wgat_ref, vl_ref, wd_ref, bd_ref, wfin_ref,
                    h_ref, q_ref,
                    *, heads, hidden, n_dst):
    x = x_ref[...]                                    # (Ns, in_dim)  f32
    xb = x.astype(jnp.bfloat16)
    y = y_ref[...]                                    # (Ns, 1)       f32

    # ---- NodeLabelPredictor layer-1 + w_self fused into one matmul ----
    z0 = jnp.dot(xb, wx_ref[...], preferred_element_type=jnp.float32)    # (Ns, 2*hidden)
    hp = jnp.maximum(z0[:, :hidden] + bp1_ref[...], 0.0)                  # ReLU
    h_self = z0[:, hidden:]                                               # w_self(x), no bias

    # q is stored 128-lane wide (columns >= 2 are exact zeros from zero-padded weights)
    q = jnp.dot(hp.astype(jnp.bfloat16), wp2_ref[...],
                preferred_element_type=jnp.float32) + bp2_ref[...]        # (Ns, 128)
    q_ref[...] = q

    # p = softmax(q[:, :2])[:, 1]  (2-class softmax == sigmoid of the logit difference)
    p_soft = 1.0 / (1.0 + jnp.exp(q[:, 0:1] - q[:, 1:2]))
    p = jnp.where(y == 2.0, p_soft, y)                                    # (Ns, 1)
    one_m_p = 1.0 - p

    # ---- LEXGAT: node-label embedding + gated source projection (Ws0|Ws1 fused) ----
    emb0 = emb01_ref[0:1, :]
    emb1 = emb01_ref[1:2, :]
    z = x + one_m_p * emb0 + p * emb1
    zs = jnp.dot(z.astype(jnp.bfloat16), ws_ref[...],
                 preferred_element_type=jnp.float32) + bs_ref[...]        # (Ns, 2*hidden)
    zg = one_m_p * zs[:, :hidden] + p * zs[:, hidden:]                    # (Ns, hidden)
    zgb = zg.astype(jnp.bfloat16)

    # ---- GAT fc + folded attn_r in one lane-dense matmul ----
    hd_dim = heads * hidden
    gat = jnp.dot(zgb, wgat_ref[...], preferred_element_type=jnp.float32)  # (Ns, H*D + H)
    feat = gat[:, :hd_dim]                                                # (Ns, H*D)
    featb = feat.astype(jnp.bfloat16)
    er = gat[:n_dst, hd_dim:hd_dim + heads]                               # (Nd, H)

    # el scores for all heads in one small matmul -> (H, Ns), lane-oriented along src
    el = jax.lax.dot_general(vl_ref[...], zgb, (((1,), (1,)), ((), ())),
                             preferred_element_type=jnp.float32)

    adj = adj_ref[...].astype(jnp.float32)                                # (Nd, Ns)
    inv_h = 1.0 / heads

    # per-head edge softmax + aggregation; head-mean folded into alpha scaling
    acc = jnp.zeros((n_dst, hidden), jnp.float32)
    for head in range(heads):                                             # static unroll (H=4)
        e = er[:, head:head + 1] + el[head:head + 1, :]                   # (Nd, Ns)
        e = jnp.where(e > 0, e, 0.2 * e)                                  # LeakyReLU(0.2)
        e = jnp.where(adj > 0, e, -1e30)                                  # mask non-edges
        m = jnp.max(e, axis=-1, keepdims=True)
        w = jnp.exp(e - m) * adj
        s = jnp.sum(w, axis=-1, keepdims=True)
        alpha = w * (inv_h * pl.reciprocal(jnp.maximum(s, 1e-30), approx=True))
        acc = acc + jnp.dot(alpha.astype(jnp.bfloat16),
                            featb[:, head * hidden:(head + 1) * hidden],
                            preferred_element_type=jnp.float32)

    # ---- ELU, gated destination projection (Wd0|Wd1 fused), sum, final projection ----
    h_act = jnp.where(acc > 0, acc, jnp.exp(acc) - 1.0)                   # ELU
    d_proj = jnp.dot(h_act.astype(jnp.bfloat16), wd_ref[...],
                     preferred_element_type=jnp.float32) + bd_ref[...]    # (Nd, 2*hidden)
    p_dst = p[:n_dst]
    h_rel = (1.0 - p_dst) * d_proj[:, :hidden] + p_dst * d_proj[:, hidden:]
    h_sum = h_self[:n_dst] + h_rel
    # wfin is zero-padded to a 128-lane multiple -> unmasked lane-dense store
    h_ref[...] = jnp.dot(h_sum.astype(jnp.bfloat16), wfin_ref[...],
                         preferred_element_type=jnp.float32)


# ------------------------------------------------------------------
# Wrapper
# ------------------------------------------------------------------

def _round_up(n, m):
    return ((n + m - 1) // m) * m


def _full_spec(shape):
    nd = len(shape)
    return pl.BlockSpec(shape, lambda i, _nd=nd: (0,) * _nd)


def lexconv_forward(params, adj, n_dst, x, y):
    """LEXConv.forward.

    adj : (n_dst, n_src) dense edge mask (1.0 = edge src j -> dst i)
    x   : (n_src, in_dim) node features
    y   : (n_src,) int labels in {0, 1, 2}  (2 = unknown -> use predicted prob)
    returns (h: (n_dst, out_dim), q: (n_src, 2))
    """
    n_src, in_dim = x.shape
    assert n_dst <= n_src, "DGL block convention: dst nodes are the first n_dst src nodes"
    hidden = params['bp1'].shape[1]
    heads = params['vl'].shape[0]
    out_dim = params['out_dim']
    out_p = params['wfin'].shape[1]          # lane-padded final width (multiple of 128)
    q_p = params['wp2'].shape[1]              # lane-padded logit width (128)

    # pad node counts to sublane multiples (8) so dst-row slices stay aligned views
    ns_p = _round_up(n_src, 8)
    nd_p = _round_up(n_dst, 8)

    x_p = jnp.zeros((ns_p, in_dim), jnp.float32).at[:n_src].set(x)
    y_p = jnp.zeros((ns_p, 1), jnp.float32).at[:n_src, 0].set(y.astype(jnp.float32))
    adj_p = jnp.zeros((nd_p, ns_p), jnp.bfloat16).at[:n_dst, :n_src].set(
        adj.astype(jnp.bfloat16))

    args = (x_p, y_p, adj_p,
            params['wx'], params['bp1'], params['wp2'], params['bp2'],
            params['emb01'], params['ws'], params['bs'],
            params['wgat'], params['vl'], params['wd'], params['bd'],
            params['wfin'])

    kernel = functools.partial(_lexconv_kernel, heads=heads, hidden=hidden, n_dst=nd_p)
    h_pad, q_pad = pl.pallas_call(
        kernel,
        out_shape=(jax.ShapeDtypeStruct((nd_p, out_p), jnp.float32),
                   jax.ShapeDtypeStruct((ns_p, q_p), jnp.float32)),
        grid=(1,),
        in_specs=[_full_spec(a.shape) for a in args],
        out_specs=(_full_spec((nd_p, out_p)), _full_spec((ns_p, q_p))),
        compiler_params=pltpu.CompilerParams(dimension_semantics=("arbitrary",)),
    )(*args)
    # TODO(synk): for large graphs, tile dst/src with an online-softmax accumulator
    # instead of keeping the whole dense block resident (v7x VMEM is 64 MiB).
    return h_pad[:n_dst, :out_dim], q_pad[:n_src, :2]


# ------------------------------------------------------------------
# Parameter construction (raw params + packed kernel operands, built once)
# ------------------------------------------------------------------

def init_lexconv_params(key, in_dim, hidden, out_dim, heads):
    ks = jax.random.split(key, 12)

    def lin(k, fin, fout):
        kw, kb = jax.random.split(k)
        return (jax.random.normal(kw, (fout, fin), jnp.float32) * 0.1,
                jax.random.normal(kb, (fout,), jnp.float32) * 0.1)

    w_self, _ = lin(ks[0], in_dim, hidden)           # bias=False
    w_final, _ = lin(ks[1], hidden, out_dim)         # bias=False
    w_p1, b_p1 = lin(ks[2], in_dim, hidden)
    w_p2, b_p2 = lin(ks[3], hidden, 2)
    emb = jax.random.normal(ks[4], (3, in_dim), jnp.float32) * 0.1
    emb = emb.at[2].set(0.0)                         # padding_idx=2
    w_s0, b_s0 = lin(ks[5], in_dim, hidden)
    w_s1, b_s1 = lin(ks[6], in_dim, hidden)
    w_d0, b_d0 = lin(ks[7], hidden, hidden)
    w_d1, b_d1 = lin(ks[8], hidden, hidden)
    w_fc = jax.random.normal(ks[9], (heads * hidden, hidden), jnp.float32) * 0.1
    attn_l = jax.random.normal(ks[10], (heads, hidden), jnp.float32) * 0.1
    attn_r = jax.random.normal(ks[11], (heads, hidden), jnp.float32) * 0.1

    raw = dict(w_self=w_self, w_final=w_final, w_p1=w_p1, b_p1=b_p1, w_p2=w_p2, b_p2=b_p2,
               emb=emb, w_s0=w_s0, b_s0=b_s0, w_s1=w_s1, b_s1=b_s1,
               w_d0=w_d0, b_d0=b_d0, w_d1=w_d1, b_d1=b_d1,
               w_fc=w_fc, attn_l=attn_l, attn_r=attn_r)

    # fold attention vectors into the fc weight:  er = z @ V_r,  el = z @ V_l^T
    v_l = jnp.stack([w_fc[h * hidden:(h + 1) * hidden, :].T @ attn_l[h]
                     for h in range(heads)], axis=0)               # (H, hidden)
    v_r = jnp.stack([w_fc[h * hidden:(h + 1) * hidden, :].T @ attn_r[h]
                     for h in range(heads)], axis=1)               # (hidden, H)

    # lane-pad final-layer weights so kernel output stores are unmasked (width % 128 == 0)
    q_p = _round_up(2, 128)
    out_p = _round_up(out_dim, 128)
    wp2_pad = jnp.zeros((hidden, q_p), jnp.float32).at[:, :2].set(w_p2.T)
    bp2_pad = jnp.zeros((1, q_p), jnp.float32).at[0, :2].set(b_p2)
    wfin_pad = jnp.zeros((hidden, out_p), jnp.float32).at[:, :out_dim].set(w_final.T)

    return dict(
        wx=jnp.concatenate([w_p1.T, w_self.T], axis=1).astype(jnp.bfloat16),   # (in, 2*hid)
        bp1=b_p1.reshape(1, hidden),
        wp2=wp2_pad.astype(jnp.bfloat16),                                      # (hid, 128)
        bp2=bp2_pad,
        emb01=emb[:2],                                                         # (2, in)
        ws=jnp.concatenate([w_s0.T, w_s1.T], axis=1).astype(jnp.bfloat16),     # (in, 2*hid)
        bs=jnp.concatenate([b_s0, b_s1]).reshape(1, 2 * hidden),
        wgat=jnp.concatenate([w_fc.T, v_r], axis=1).astype(jnp.bfloat16),      # (hid, H*D+H)
        vl=v_l.astype(jnp.bfloat16),                                           # (H, hid)
        wd=jnp.concatenate([w_d0.T, w_d1.T], axis=1).astype(jnp.bfloat16),     # (hid, 2*hid)
        bd=jnp.concatenate([b_d0, b_d1]).reshape(1, 2 * hidden),
        wfin=wfin_pad.astype(jnp.bfloat16),                                    # (hid, out_p)
        out_dim=out_dim,
        raw=raw,
    )


# ------------------------------------------------------------------
# Plain-JAX f32 reference (mirrors the PyTorch module graph)
# ------------------------------------------------------------------

def lexconv_reference(raw, adj, n_dst, x, y):
    yf = y.astype(jnp.float32)
    hp = jnp.maximum(x @ raw['w_p1'].T + raw['b_p1'], 0.0)
    q = hp @ raw['w_p2'].T + raw['b_p2']
    p = jax.nn.softmax(q, axis=1)[:, 1]
    p = jnp.where(y == 2, p, yf)[:, None]

    z = x + (1.0 - p) * raw['emb'][0] + p * raw['emb'][1]
    z = (1.0 - p) * (z @ raw['w_s0'].T + raw['b_s0']) + p * (z @ raw['w_s1'].T + raw['b_s1'])

    heads, hidden = raw['attn_l'].shape
    feat = (z @ raw['w_fc'].T).reshape(-1, heads, hidden)         # (Ns, H, D)
    el = jnp.einsum('nhd,hd->nh', feat, raw['attn_l'])
    er = jnp.einsum('nhd,hd->nh', feat[:n_dst], raw['attn_r'])
    e = er[:, None, :] + el[None, :, :]                           # (Nd, Ns, H)
    e = jnp.where(e > 0, e, 0.2 * e)
    e = jnp.where(adj[:, :, None] > 0, e, -1e30)
    m = jnp.max(e, axis=1, keepdims=True)
    w = jnp.exp(e - m) * adj[:, :, None]
    s = jnp.sum(w, axis=1, keepdims=True)
    alpha = w / jnp.maximum(s, 1e-30)
    h = jnp.einsum('dnh,nhk->dhk', alpha, feat)                   # (Nd, H, D)
    h = jnp.mean(h, axis=1)
    h = jnp.where(h > 0, h, jnp.expm1(h))                         # ELU
    pd = p[:n_dst]
    h = (1.0 - pd) * (h @ raw['w_d0'].T + raw['b_d0']) + pd * (h @ raw['w_d1'].T + raw['b_d1'])
    h_self = x[:n_dst] @ raw['w_self'].T
    return (h_self + h) @ raw['w_final'].T, q


# ------------------------------------------------------------------
# Example run
# ------------------------------------------------------------------

if __name__ == "__main__":
    in_dim, hidden, out_dim, heads = 16, 32, 32, 4
    n_src, n_dst = 16, 12            # n_dst not a multiple of 8 -> exercises padding path

    key = jax.random.PRNGKey(0)
    kx, ky, kp = jax.random.split(key, 3)
    x = jax.random.normal(kx, (n_src, in_dim), jnp.float32)
    y = jax.random.randint(ky, (n_src,), 0, 2)       # known labels in {0, 1}
    y = y.at[:n_dst].set(2)                          # dst nodes: unknown -> predicted prob

    rows = jnp.arange(n_dst)[:, None]
    cols = jnp.arange(n_src)[None, :]
    adj = (((rows + cols) % 3 == 0) | (rows == cols)).astype(jnp.float32)  # every dst has an edge

    params = init_lexconv_params(kp, in_dim, hidden, out_dim, heads)

    h, q = lexconv_forward(params, adj, n_dst, x, y)
    jax.block_until_ready(h)
    jax.block_until_ready(q)

    assert h.shape == (n_dst, out_dim) and q.shape == (n_src, 2)

    h_ref, q_ref = lexconv_reference(params['raw'], adj, n_dst, x, y)
    assert bool(jnp.allclose(q, q_ref, atol=5e-2, rtol=5e-2)), \
        float(jnp.max(jnp.abs(q - q_ref)))
    assert bool(jnp.allclose(h, h_ref, atol=5e-2, rtol=5e-2)), \
        float(jnp.max(jnp.abs(h - h_ref)))
    print("KERNEL_OK")
</pallas_src>

<mosaic_0001>
module attributes {stable_mosaic.version = 11 : i64} {
  func.func @_lexconv_kernel(%arg0: i32, %arg1: memref<16x16xf32, #tpu.memory_space<vmem>>, %arg2: memref<16x1xf32, #tpu.memory_space<vmem>>, %arg3: memref<16x16xbf16, #tpu.memory_space<vmem>>, %arg4: memref<16x64xbf16, #tpu.memory_space<vmem>>, %arg5: memref<1x32xf32, #tpu.memory_space<vmem>>, %arg6: memref<32x128xbf16, #tpu.memory_space<vmem>>, %arg7: memref<1x128xf32, #tpu.memory_space<vmem>>, %arg8: memref<2x16xf32, #tpu.memory_space<vmem>>, %arg9: memref<16x64xbf16, #tpu.memory_space<vmem>>, %arg10: memref<1x64xf32, #tpu.memory_space<vmem>>, %arg11: memref<32x132xbf16, #tpu.memory_space<vmem>>, %arg12: memref<4x32xbf16, #tpu.memory_space<vmem>>, %arg13: memref<32x64xbf16, #tpu.memory_space<vmem>>, %arg14: memref<1x64xf32, #tpu.memory_space<vmem>>, %arg15: memref<32x128xbf16, #tpu.memory_space<vmem>>, %arg16: memref<16x128xf32, #tpu.memory_space<vmem>>, %arg17: memref<16x128xf32, #tpu.memory_space<vmem>>) attributes {dimension_semantics = [#tpu.dimension_semantics<arbitrary>], iteration_bounds = array<i64: 1>, scalar_prefetch = 0 : i64, scratch_operands = 0 : i64, tpu.core_type = #tpu.core_type<tc>, window_params = [{pipeline_mode = #tpu.pipeline_mode<synchronous>, transform_indices = @transform_0, window_bounds = array<i64: 16, 16>}, {pipeline_mode = #tpu.pipeline_mode<synchronous>, transform_indices = @transform_1, window_bounds = array<i64: 16, 1>}, {pipeline_mode = #tpu.pipeline_mode<synchronous>, transform_indices = @transform_2, window_bounds = array<i64: 16, 16>}, {pipeline_mode = #tpu.pipeline_mode<synchronous>, transform_indices = @transform_3, window_bounds = array<i64: 16, 64>}, {pipeline_mode = #tpu.pipeline_mode<synchronous>, transform_indices = @transform_4, window_bounds = array<i64: 1, 32>}, {pipeline_mode = #tpu.pipeline_mode<synchronous>, transform_indices = @transform_5, window_bounds = array<i64: 32, 128>}, {pipeline_mode = #tpu.pipeline_mode<synchronous>, transform_indices = @transform_6, window_bounds = array<i64: 1, 128>}, {pipeline_mode = #tpu.pipeline_mode<synchronous>, transform_indices = @transform_7, window_bounds = array<i64: 2, 16>}, {pipeline_mode = #tpu.pipeline_mode<synchronous>, transform_indices = @transform_8, window_bounds = array<i64: 16, 64>}, {pipeline_mode = #tpu.pipeline_mode<synchronous>, transform_indices = @transform_9, window_bounds = array<i64: 1, 64>}, {pipeline_mode = #tpu.pipeline_mode<synchronous>, transform_indices = @transform_10, window_bounds = array<i64: 32, 132>}, {pipeline_mode = #tpu.pipeline_mode<synchronous>, transform_indices = @transform_11, window_bounds = array<i64: 4, 32>}, {pipeline_mode = #tpu.pipeline_mode<synchronous>, transform_indices = @transform_12, window_bounds = array<i64: 32, 64>}, {pipeline_mode = #tpu.pipeline_mode<synchronous>, transform_indices = @transform_13, window_bounds = array<i64: 1, 64>}, {pipeline_mode = #tpu.pipeline_mode<synchronous>, transform_indices = @transform_14, window_bounds = array<i64: 32, 128>}, {pipeline_mode = #tpu.pipeline_mode<synchronous>, transform_indices = @transform_15, window_bounds = array<i64: 16, 128>}, {pipeline_mode = #tpu.pipeline_mode<synchronous>, transform_indices = @transform_16, window_bounds = array<i64: 16, 128>}]} {
    %c0 = arith.constant 0 : index
    %c0_0 = arith.constant 0 : index
    %0 = vector.load %arg1[%c0, %c0_0] : memref<16x16xf32, #tpu.memory_space<vmem>>, vector<16x16xf32>
    %1 = arith.truncf %0 : vector<16x16xf32> to vector<16x16xbf16>
    %c0_1 = arith.constant 0 : index
    %c0_2 = arith.constant 0 : index
    %2 = vector.load %arg2[%c0_1, %c0_2] : memref<16x1xf32, #tpu.memory_space<vmem>>, vector<16x1xf32>
    %c0_3 = arith.constant 0 : index
    %c0_4 = arith.constant 0 : index
    %3 = vector.load %arg4[%c0_3, %c0_4] : memref<16x64xbf16, #tpu.memory_space<vmem>>, vector<16x64xbf16>
    %cst = arith.constant dense<0.000000e+00> : vector<16x64xf32>
    %4 = tpu.matmul %1, %3, %cst {dimension_numbers = #tpu.dot_dimension_numbers<[1], [0], [0], [1], [0, 0, 1, 1], [], []>} : vector<16x16xbf16>, vector<16x64xbf16>, vector<16x64xf32> -> vector<16x64xf32>
    %5 = vector.extract_strided_slice %4 {offsets = [0, 0], sizes = [16, 32], strides = [1, 1]} : vector<16x64xf32> to vector<16x32xf32>
    %c0_5 = arith.constant 0 : index
    %c0_6 = arith.constant 0 : index
    %6 = vector.load %arg5[%c0_5, %c0_6] : memref<1x32xf32, #tpu.memory_space<vmem>>, vector<1x32xf32>
    %7 = vector.broadcast %6 : vector<1x32xf32> to vector<16x32xf32>
    %8 = arith.addf %5, %7 : vector<16x32xf32>
    %cst_7 = arith.constant 0.000000e+00 : f32
    %9 = vector.broadcast %cst_7 : f32 to vector<16x32xf32>
    %10 = arith.maximumf %8, %9 : vector<16x32xf32>
    %11 = vector.extract_strided_slice %4 {offsets = [0, 32], sizes = [16, 32], strides = [1, 1]} : vector<16x64xf32> to vector<16x32xf32>
    %12 = arith.truncf %10 : vector<16x32xf32> to vector<16x32xbf16>
    %c0_8 = arith.constant 0 : index
    %c0_9 = arith.constant 0 : index
    %13 = vector.load %arg6[%c0_8, %c0_9] : memref<32x128xbf16, #tpu.memory_space<vmem>>, vector<32x128xbf16>
    %cst_10 = arith.constant dense<0.000000e+00> : vector<16x128xf32>
    %14 = tpu.matmul %12, %13, %cst_10 {dimension_numbers = #tpu.dot_dimension_numbers<[1], [0], [0], [1], [0, 0, 1, 1], [], []>} : vector<16x32xbf16>, vector<32x128xbf16>, vector<16x128xf32> -> vector<16x128xf32>
    %c0_11 = arith.constant 0 : index
    %c0_12 = arith.constant 0 : index
    %15 = vector.load %arg7[%c0_11, %c0_12] : memref<1x128xf32, #tpu.memory_space<vmem>>, vector<1x128xf32>
    %16 = vector.broadcast %15 : vector<1x128xf32> to vector<16x128xf32>
    %17 = arith.addf %14, %16 : vector<16x128xf32>
    %c0_13 = arith.constant 0 : index
    %c0_14 = arith.constant 0 : index
    %18 = vector.load %arg17[%c0_13, %c0_14] : memref<16x128xf32, #tpu.memory_space<vmem>>, vector<16x128xf32>
    tpu.vector_store %arg17[%c0_13, %c0_14], %17 {strides = array<i32>} : memref<16x128xf32, #tpu.memory_space<vmem>>, vector<16x128xf32>,
    %19 = vector.extract_strided_slice %17 {offsets = [0, 0], sizes = [16, 1], strides = [1, 1]} : vector<16x128xf32> to vector<16x1xf32>
    %20 = vector.extract_strided_slice %17 {offsets = [0, 1], sizes = [16, 1], strides = [1, 1]} : vector<16x128xf32> to vector<16x1xf32>
    %21 = arith.subf %19, %20 : vector<16x1xf32>
    %22 = math.exp %21 : vector<16x1xf32>
    %cst_15 = arith.constant 1.000000e+00 : f32
    %23 = vector.broadcast %cst_15 : f32 to vector<16x1xf32>
    %24 = arith.addf %23, %22 : vector<16x1xf32>
    %cst_16 = arith.constant 1.000000e+00 : f32
    %25 = vector.broadcast %cst_16 : f32 to vector<16x1xf32>
    %26 = arith.divf %25, %24 : vector<16x1xf32>
    %cst_17 = arith.constant 2.000000e+00 : f32
    %27 = vector.broadcast %cst_17 : f32 to vector<16x1xf32>
    %28 = arith.cmpf oeq, %2, %27 : vector<16x1xf32>
    %29 = arith.select %28, %26, %2 : vector<16x1xi1>, vector<16x1xf32>
    %cst_18 = arith.constant 1.000000e+00 : f32
    %30 = vector.broadcast %cst_18 : f32 to vector<16x1xf32>
    %31 = arith.subf %30, %29 : vector<16x1xf32>
    %c0_19 = arith.constant 0 : index
    %c0_20 = arith.constant 0 : index
    %32 = vector.load %arg8[%c0_19, %c0_20] : memref<2x16xf32, #tpu.memory_space<vmem>>, vector<1x16xf32>
    %c1 = arith.constant 1 : index
    %c0_21 = arith.constant 0 : index
    %33 = vector.load %arg8[%c1, %c0_21] : memref<2x16xf32, #tpu.memory_space<vmem>>, vector<1x16xf32>
    %34 = vector.broadcast %31 : vector<16x1xf32> to vector<16x16xf32>
    %35 = vector.broadcast %32 : vector<1x16xf32> to vector<16x16xf32>
    %36 = arith.mulf %34, %35 : vector<16x16xf32>
    %37 = arith.addf %0, %36 : vector<16x16xf32>
    %38 = vector.broadcast %29 : vector<16x1xf32> to vector<16x16xf32>
    %39 = vector.broadcast %33 : vector<1x16xf32> to vector<16x16xf32>
    %40 = arith.mulf %38, %39 : vector<16x16xf32>
    %41 = arith.addf %37, %40 : vector<16x16xf32>
    %42 = arith.truncf %41 : vector<16x16xf32> to vector<16x16xbf16>
    %c0_22 = arith.constant 0 : index
    %c0_23 = arith.constant 0 : index
    %43 = vector.load %arg9[%c0_22, %c0_23] : memref<16x64xbf16, #tpu.memory_space<vmem>>, vector<16x64xbf16>
    %cst_24 = arith.constant dense<0.000000e+00> : vector<16x64xf32>
    %44 = tpu.matmul %42, %43, %cst_24 {dimension_numbers = #tpu.dot_dimension_numbers<[1], [0], [0], [1], [0, 0, 1, 1], [], []>} : vector<16x16xbf16>, vector<16x64xbf16>, vector<16x64xf32> -> vector<16x64xf32>
    %c0_25 = arith.constant 0 : index
    %c0_26 = arith.constant 0 : index
    %45 = vector.load %arg10[%c0_25, %c0_26] : memref<1x64xf32, #tpu.memory_space<vmem>>, vector<1x64xf32>
    %46 = vector.broadcast %45 : vector<1x64xf32> to vector<16x64xf32>
    %47 = arith.addf %44, %46 : vector<16x64xf32>
    %48 = vector.extract_strided_slice %47 {offsets = [0, 0], sizes = [16, 32], strides = [1, 1]} : vector<16x64xf32> to vector<16x32xf32>
    %49 = vector.broadcast %31 : vector<16x1xf32> to vector<16x32xf32>
    %50 = arith.mulf %49, %48 : vector<16x32xf32>
    %51 = vector.extract_strided_slice %47 {offsets = [0, 32], sizes = [16, 32], strides = [1, 1]} : vector<16x64xf32> to vector<16x32xf32>
    %52 = vector.broadcast %29 : vector<16x1xf32> to vector<16x32xf32>
    %53 = arith.mulf %52, %51 : vector<16x32xf32>
    %54 = arith.addf %50, %53 : vector<16x32xf32>
    %55 = arith.truncf %54 : vector<16x32xf32> to vector<16x32xbf16>
    %c0_27 = arith.constant 0 : index
    %c0_28 = arith.constant 0 : index
    %56 = vector.load %arg11[%c0_27, %c0_28] : memref<32x132xbf16, #tpu.memory_space<vmem>>, vector<32x132xbf16>
    %cst_29 = arith.constant dense<0.000000e+00> : vector<16x132xf32>
    %57 = tpu.matmul %55, %56, %cst_29 {dimension_numbers = #tpu.dot_dimension_numbers<[1], [0], [0], [1], [0, 0, 1, 1], [], []>} : vector<16x32xbf16>, vector<32x132xbf16>, vector<16x132xf32> -> vector<16x132xf32>
    %58 = vector.extract_strided_slice %57 {offsets = [0, 0], sizes = [16, 128], strides = [1, 1]} : vector<16x132xf32> to vector<16x128xf32>
    %59 = arith.truncf %58 : vector<16x128xf32> to vector<16x128xbf16>
    %60 = vector.extract_strided_slice %57 {offsets = [0, 128], sizes = [16, 4], strides = [1, 1]} : vector<16x132xf32> to vector<16x4xf32>
    %c0_30 = arith.constant 0 : index
    %c0_31 = arith.constant 0 : index
    %61 = vector.load %arg12[%c0_30, %c0_31] : memref<4x32xbf16, #tpu.memory_space<vmem>>, vector<4x32xbf16>
    %cst_32 = arith.constant dense<0.000000e+00> : vector<4x16xf32>
    %62 = tpu.matmul %61, %55, %cst_32 {dimension_numbers = #tpu.dot_dimension_numbers<[1], [1], [0], [0], [0, 0, 1, 0], [], []>} : vector<4x32xbf16>, vector<16x32xbf16>, vector<4x16xf32> -> vector<4x16xf32>
    %c0_33 = arith.constant 0 : index
    %c0_34 = arith.constant 0 : index
    %63 = vector.load %arg3[%c0_33, %c0_34] : memref<16x16xbf16, #tpu.memory_space<vmem>>, vector<16x16xbf16>
    %64 = arith.extf %63 : vector<16x16xbf16> to vector<16x16xf32>
    %cst_35 = arith.constant 0.000000e+00 : f32
    %65 = vector.broadcast %cst_35 : f32 to vector<16x32xf32>
    %66 = vector.extract_strided_slice %60 {offsets = [0, 0], sizes = [16, 1], strides = [1, 1]} : vector<16x4xf32> to vector<16x1xf32>
    %67 = vector.extract_strided_slice %62 {offsets = [0, 0], sizes = [1, 16], strides = [1, 1]} : vector<4x16xf32> to vector<1x16xf32>
    %68 = vector.broadcast %66 : vector<16x1xf32> to vector<16x16xf32>
    %69 = vector.broadcast %67 : vector<1x16xf32> to vector<16x16xf32>
    %70 = arith.addf %68, %69 : vector<16x16xf32>
    %cst_36 = arith.constant 0.000000e+00 : f32
    %71 = vector.broadcast %cst_36 : f32 to vector<16x16xf32>
    %72 = arith.cmpf ogt, %70, %71 : vector<16x16xf32>
    %cst_37 = arith.constant 2.000000e-01 : f32
    %73 = vector.broadcast %cst_37 : f32 to vector<16x16xf32>
    %74 = arith.mulf %73, %70 : vector<16x16xf32>
    %75 = arith.select %72, %70, %74 : vector<16x16xi1>, vector<16x16xf32>
    %cst_38 = arith.constant 0.000000e+00 : f32
    %76 = vector.broadcast %cst_38 : f32 to vector<16x16xf32>
    %77 = arith.cmpf ogt, %64, %76 : vector<16x16xf32>
    %cst_39 = arith.constant -1.000000e+30 : f32
    %78 = vector.broadcast %cst_39 : f32 to vector<16x16xf32>
    %79 = arith.select %77, %75, %78 : vector<16x16xi1>, vector<16x16xf32>
    %cst_40 = arith.constant dense<0xFF800000> : vector<16xf32>
    %80 = vector.multi_reduction <maximumf>, %79, %cst_40 [1] : vector<16x16xf32> to vector<16xf32>
    %81 = vector.shape_cast %80 : vector<16xf32> to vector<16x1xf32>
    %82 = vector.broadcast %81 : vector<16x1xf32> to vector<16x16xf32>
    %83 = arith.subf %79, %82 : vector<16x16xf32>
    %84 = math.exp %83 : vector<16x16xf32>
    %85 = arith.mulf %84, %64 : vector<16x16xf32>
    %cst_41 = arith.constant dense<0.000000e+00> : vector<16xf32>
    %86 = vector.multi_reduction <add>, %85, %cst_41 [1] : vector<16x16xf32> to vector<16xf32>
    %87 = vector.shape_cast %86 : vector<16xf32> to vector<16x1xf32>
    %cst_42 = arith.constant 1.000000e-30 : f32
    %88 = vector.broadcast %cst_42 : f32 to vector<16x1xf32>
    %89 = arith.maximumf %87, %88 : vector<16x1xf32>
    %90 = tpu.reciprocal %89 {approx = true} : vector<16x1xf32> -> vector<16x1xf32>
    %cst_43 = arith.constant 2.500000e-01 : f32
    %91 = vector.broadcast %cst_43 : f32 to vector<16x1xf32>
    %92 = arith.mulf %91, %90 : vector<16x1xf32>
    %93 = vector.broadcast %92 : vector<16x1xf32> to vector<16x16xf32>
    %94 = arith.mulf %85, %93 : vector<16x16xf32>
    %95 = arith.truncf %94 : vector<16x16xf32> to vector<16x16xbf16>
    %96 = vector.extract_strided_slice %59 {offsets = [0, 0], sizes = [16, 32], strides = [1, 1]} : vector<16x128xbf16> to vector<16x32xbf16>
    %cst_44 = arith.constant dense<0.000000e+00> : vector<16x32xf32>
    %97 = tpu.matmul %95, %96, %cst_44 {dimension_numbers = #tpu.dot_dimension_numbers<[1], [0], [0], [1], [0, 0, 1, 1], [], []>} : vector<16x16xbf16>, vector<16x32xbf16>, vector<16x32xf32> -> vector<16x32xf32>
    %98 = arith.addf %65, %97 : vector<16x32xf32>
    %99 = vector.extract_strided_slice %60 {offsets = [0, 1], sizes = [16, 1], strides = [1, 1]} : vector<16x4xf32> to vector<16x1xf32>
    %100 = vector.extract_strided_slice %62 {offsets = [1, 0], sizes = [1, 16], strides = [1, 1]} : vector<4x16xf32> to vector<1x16xf32>
    %101 = vector.broadcast %99 : vector<16x1xf32> to vector<16x16xf32>
    %102 = vector.broadcast %100 : vector<1x16xf32> to vector<16x16xf32>
    %103 = arith.addf %101, %102 : vector<16x16xf32>
    %cst_45 = arith.constant 0.000000e+00 : f32
    %104 = vector.broadcast %cst_45 : f32 to vector<16x16xf32>
    %105 = arith.cmpf ogt, %103, %104 : vector<16x16xf32>
    %cst_46 = arith.constant 2.000000e-01 : f32
    %106 = vector.broadcast %cst_46 : f32 to vector<16x16xf32>
    %107 = arith.mulf %106, %103 : vector<16x16xf32>
    %108 = arith.select %105, %103, %107 : vector<16x16xi1>, vector<16x16xf32>
    %cst_47 = arith.constant 0.000000e+00 : f32
    %109 = vector.broadcast %cst_47 : f32 to vector<16x16xf32>
    %110 = arith.cmpf ogt, %64, %109 : vector<16x16xf32>
    %cst_48 = arith.constant -1.000000e+30 : f32
    %111 = vector.broadcast %cst_48 : f32 to vector<16x16xf32>
    %112 = arith.select %110, %108, %111 : vector<16x16xi1>, vector<16x16xf32>
    %cst_49 = arith.constant dense<0xFF800000> : vector<16xf32>
    %113 = vector.multi_reduction <maximumf>, %112, %cst_49 [1] : vector<16x16xf32> to vector<16xf32>
    %114 = vector.shape_cast %113 : vector<16xf32> to vector<16x1xf32>
    %115 = vector.broadcast %114 : vector<16x1xf32> to vector<16x16xf32>
    %116 = arith.subf %112, %115 : vector<16x16xf32>
    %117 = math.exp %116 : vector<16x16xf32>
    %118 = arith.mulf %117, %64 : vector<16x16xf32>
    %cst_50 = arith.constant dense<0.000000e+00> : vector<16xf32>
    %119 = vector.multi_reduction <add>, %118, %cst_50 [1] : vector<16x16xf32> to vector<16xf32>
    %120 = vector.shape_cast %119 : vector<16xf32> to vector<16x1xf32>
    %cst_51 = arith.constant 1.000000e-30 : f32
    %121 = vector.broadcast %cst_51 : f32 to vector<16x1xf32>
    %122 = arith.maximumf %120, %121 : vector<16x1xf32>
    %123 = tpu.reciprocal %122 {approx = true} : vector<16x1xf32> -> vector<16x1xf32>
    %cst_52 = arith.constant 2.500000e-01 : f32
    %124 = vector.broadcast %cst_52 : f32 to vector<16x1xf32>
    %125 = arith.mulf %124, %123 : vector<16x1xf32>
    %126 = vector.broadcast %125 : vector<16x1xf32> to vector<16x16xf32>
    %127 = arith.mulf %118, %126 : vector<16x16xf32>
    %128 = arith.truncf %127 : vector<16x16xf32> to vector<16x16xbf16>
    %129 = vector.extract_strided_slice %59 {offsets = [0, 32], sizes = [16, 32], strides = [1, 1]} : vector<16x128xbf16> to vector<16x32xbf16>
    %cst_53 = arith.constant dense<0.000000e+00> : vector<16x32xf32>
    %130 = tpu.matmul %128, %129, %cst_53 {dimension_numbers = #tpu.dot_dimension_numbers<[1], [0], [0], [1], [0, 0, 1, 1], [], []>} : vector<16x16xbf16>, vector<16x32xbf16>, vector<16x32xf32> -> vector<16x32xf32>
    %131 = arith.addf %98, %130 : vector<16x32xf32>
    %132 = vector.extract_strided_slice %60 {offsets = [0, 2], sizes = [16, 1], strides = [1, 1]} : vector<16x4xf32> to vector<16x1xf32>
    %133 = vector.extract_strided_slice %62 {offsets = [2, 0], sizes = [1, 16], strides = [1, 1]} : vector<4x16xf32> to vector<1x16xf32>
    %134 = vector.broadcast %132 : vector<16x1xf32> to vector<16x16xf32>
    %135 = vector.broadcast %133 : vector<1x16xf32> to vector<16x16xf32>
    %136 = arith.addf %134, %135 : vector<16x16xf32>
    %cst_54 = arith.constant 0.000000e+00 : f32
    %137 = vector.broadcast %cst_54 : f32 to vector<16x16xf32>
    %138 = arith.cmpf ogt, %136, %137 : vector<16x16xf32>
    %cst_55 = arith.constant 2.000000e-01 : f32
    %139 = vector.broadcast %cst_55 : f32 to vector<16x16xf32>
    %140 = arith.mulf %139, %136 : vector<16x16xf32>
    %141 = arith.select %138, %136, %140 : vector<16x16xi1>, vector<16x16xf32>
    %cst_56 = arith.constant 0.000000e+00 : f32
    %142 = vector.broadcast %cst_56 : f32 to vector<16x16xf32>
    %143 = arith.cmpf ogt, %64, %142 : vector<16x16xf32>
    %cst_57 = arith.constant -1.000000e+30 : f32
    %144 = vector.broadcast %cst_57 : f32 to vector<16x16xf32>
    %145 = arith.select %143, %141, %144 : vector<16x16xi1>, vector<16x16xf32>
    %cst_58 = arith.constant dense<0xFF800000> : vector<16xf32>
    %146 = vector.multi_reduction <maximumf>, %145, %cst_58 [1] : vector<16x16xf32> to vector<16xf32>
    %147 = vector.shape_cast %146 : vector<16xf32> to vector<16x1xf32>
    %148 = vector.broadcast %147 : vector<16x1xf32> to vector<16x16xf32>
    %149 = arith.subf %145, %148 : vector<16x16xf32>
    %150 = math.exp %149 : vector<16x16xf32>
    %151 = arith.mulf %150, %64 : vector<16x16xf32>
    %cst_59 = arith.constant dense<0.000000e+00> : vector<16xf32>
    %152 = vector.multi_reduction <add>, %151, %cst_59 [1] : vector<16x16xf32> to vector<16xf32>
    %153 = vector.shape_cast %152 : vector<16xf32> to vector<16x1xf32>
    %cst_60 = arith.constant 1.000000e-30 : f32
    %154 = vector.broadcast %cst_60 : f32 to vector<16x1xf32>
    %155 = arith.maximumf %153, %154 : vector<16x1xf32>
    %156 = tpu.reciprocal %155 {approx = true} : vector<16x1xf32> -> vector<16x1xf32>
    %cst_61 = arith.constant 2.500000e-01 : f32
    %157 = vector.broadcast %cst_61 : f32 to vector<16x1xf32>
    %158 = arith.mulf %157, %156 : vector<16x1xf32>
    %159 = vector.broadcast %158 : vector<16x1xf32> to vector<16x16xf32>
    %160 = arith.mulf %151, %159 : vector<16x16xf32>
    %161 = arith.truncf %160 : vector<16x16xf32> to vector<16x16xbf16>
    %162 = vector.extract_strided_slice %59 {offsets = [0, 64], sizes = [16, 32], strides = [1, 1]} : vector<16x128xbf16> to vector<16x32xbf16>
    %cst_62 = arith.constant dense<0.000000e+00> : vector<16x32xf32>
    %163 = tpu.matmul %161, %162, %cst_62 {dimension_numbers = #tpu.dot_dimension_numbers<[1], [0], [0], [1], [0, 0, 1, 1], [], []>} : vector<16x16xbf16>, vector<16x32xbf16>, vector<16x32xf32> -> vector<16x32xf32>
    %164 = arith.addf %131, %163 : vector<16x32xf32>
    %165 = vector.extract_strided_slice %60 {offsets = [0, 3], sizes = [16, 1], strides = [1, 1]} : vector<16x4xf32> to vector<16x1xf32>
    %166 = vector.extract_strided_slice %62 {offsets = [3, 0], sizes = [1, 16], strides = [1, 1]} : vector<4x16xf32> to vector<1x16xf32>
    %167 = vector.broadcast %165 : vector<16x1xf32> to vector<16x16xf32>
    %168 = vector.broadcast %166 : vector<1x16xf32> to vector<16x16xf32>
    %169 = arith.addf %167, %168 : vector<16x16xf32>
    %cst_63 = arith.constant 0.000000e+00 : f32
    %170 = vector.broadcast %cst_63 : f32 to vector<16x16xf32>
    %171 = arith.cmpf ogt, %169, %170 : vector<16x16xf32>
    %cst_64 = arith.constant 2.000000e-01 : f32
    %172 = vector.broadcast %cst_64 : f32 to vector<16x16xf32>
    %173 = arith.mulf %172, %169 : vector<16x16xf32>
    %174 = arith.select %171, %169, %173 : vector<16x16xi1>, vector<16x16xf32>
    %cst_65 = arith.constant 0.000000e+00 : f32
    %175 = vector.broadcast %cst_65 : f32 to vector<16x16xf32>
    %176 = arith.cmpf ogt, %64, %175 : vector<16x16xf32>
    %cst_66 = arith.constant -1.000000e+30 : f32
    %177 = vector.broadcast %cst_66 : f32 to vector<16x16xf32>
    %178 = arith.select %176, %174, %177 : vector<16x16xi1>, vector<16x16xf32>
    %cst_67 = arith.constant dense<0xFF800000> : vector<16xf32>
    %179 = vector.multi_reduction <maximumf>, %178, %cst_67 [1] : vector<16x16xf32> to vector<16xf32>
    %180 = vector.shape_cast %179 : vector<16xf32> to vector<16x1xf32>
    %181 = vector.broadcast %180 : vector<16x1xf32> to vector<16x16xf32>
    %182 = arith.subf %178, %181 : vector<16x16xf32>
    %183 = math.exp %182 : vector<16x16xf32>
    %184 = arith.mulf %183, %64 : vector<16x16xf32>
    %cst_68 = arith.constant dense<0.000000e+00> : vector<16xf32>
    %185 = vector.multi_reduction <add>, %184, %cst_68 [1] : vector<16x16xf32> to vector<16xf32>
    %186 = vector.shape_cast %185 : vector<16xf32> to vector<16x1xf32>
    %cst_69 = arith.constant 1.000000e-30 : f32
    %187 = vector.broadcast %cst_69 : f32 to vector<16x1xf32>
    %188 = arith.maximumf %186, %187 : vector<16x1xf32>
    %189 = tpu.reciprocal %188 {approx = true} : vector<16x1xf32> -> vector<16x1xf32>
    %cst_70 = arith.constant 2.500000e-01 : f32
    %190 = vector.broadcast %cst_70 : f32 to vector<16x1xf32>
    %191 = arith.mulf %190, %189 : vector<16x1xf32>
    %192 = vector.broadcast %191 : vector<16x1xf32> to vector<16x16xf32>
    %193 = arith.mulf %184, %192 : vector<16x16xf32>
    %194 = arith.truncf %193 : vector<16x16xf32> to vector<16x16xbf16>
    %195 = vector.extract_strided_slice %59 {offsets = [0, 96], sizes = [16, 32], strides = [1, 1]} : vector<16x128xbf16> to vector<16x32xbf16>
    %cst_71 = arith.constant dense<0.000000e+00> : vector<16x32xf32>
    %196 = tpu.matmul %194, %195, %cst_71 {dimension_numbers = #tpu.dot_dimension_numbers<[1], [0], [0], [1], [0, 0, 1, 1], [], []>} : vector<16x16xbf16>, vector<16x32xbf16>, vector<16x32xf32> -> vector<16x32xf32>
    %197 = arith.addf %164, %196 : vector<16x32xf32>
    %cst_72 = arith.constant 0.000000e+00 : f32
    %198 = vector.broadcast %cst_72 : f32 to vector<16x32xf32>
    %199 = arith.cmpf ogt, %197, %198 : vector<16x32xf32>
    %200 = math.exp %197 : vector<16x32xf32>
    %cst_73 = arith.constant 1.000000e+00 : f32
    %201 = vector.broadcast %cst_73 : f32 to vector<16x32xf32>
    %202 = arith.subf %200, %201 : vector<16x32xf32>
    %203 = arith.select %199, %197, %202 : vector<16x32xi1>, vector<16x32xf32>
    %204 = arith.truncf %203 : vector<16x32xf32> to vector<16x32xbf16>
    %c0_74 = arith.constant 0 : index
    %c0_75 = arith.constant 0 : index
    %205 = vector.load %arg13[%c0_74, %c0_75] : memref<32x64xbf16, #tpu.memory_space<vmem>>, vector<32x64xbf16>
    %cst_76 = arith.constant dense<0.000000e+00> : vector<16x64xf32>
    %206 = tpu.matmul %204, %205, %cst_76 {dimension_numbers = #tpu.dot_dimension_numbers<[1], [0], [0], [1], [0, 0, 1, 1], [], []>} : vector<16x32xbf16>, vector<32x64xbf16>, vector<16x64xf32> -> vector<16x64xf32>
    %c0_77 = arith.constant 0 : index
    %c0_78 = arith.constant 0 : index
    %207 = vector.load %arg14[%c0_77, %c0_78] : memref<1x64xf32, #tpu.memory_space<vmem>>, vector<1x64xf32>
    %208 = vector.broadcast %207 : vector<1x64xf32> to vector<16x64xf32>
    %209 = arith.addf %206, %208 : vector<16x64xf32>
    %cst_79 = arith.constant 1.000000e+00 : f32
    %210 = vector.broadcast %cst_79 : f32 to vector<16x1xf32>
    %211 = arith.subf %210, %29 : vector<16x1xf32>
    %212 = vector.extract_strided_slice %209 {offsets = [0, 0], sizes = [16, 32], strides = [1, 1]} : vector<16x64xf32> to vector<16x32xf32>
    %213 = vector.broadcast %211 : vector<16x1xf32> to vector<16x32xf32>
    %214 = arith.mulf %213, %212 : vector<16x32xf32>
    %215 = vector.extract_strided_slice %209 {offsets = [0, 32], sizes = [16, 32], strides = [1, 1]} : vector<16x64xf32> to vector<16x32xf32>
    %216 = vector.broadcast %29 : vector<16x1xf32> to vector<16x32xf32>
    %217 = arith.mulf %216, %215 : vector<16x32xf32>
    %218 = arith.addf %214, %217 : vector<16x32xf32>
    %219 = arith.addf %11, %218 : vector<16x32xf32>
    %220 = arith.truncf %219 : vector<16x32xf32> to vector<16x32xbf16>
    %c0_80 = arith.constant 0 : index
    %c0_81 = arith.constant 0 : index
    %221 = vector.load %arg15[%c0_80, %c0_81] : memref<32x128xbf16, #tpu.memory_space<vmem>>, vector<32x128xbf16>
    %cst_82 = arith.constant dense<0.000000e+00> : vector<16x128xf32>
    %222 = tpu.matmul %220, %221, %cst_82 {dimension_numbers = #tpu.dot_dimension_numbers<[1], [0], [0], [1], [0, 0, 1, 1], [], []>} : vector<16x32xbf16>, vector<32x128xbf16>, vector<16x128xf32> -> vector<16x128xf32>
    %c0_83 = arith.constant 0 : index
    %c0_84 = arith.constant 0 : index
    %223 = vector.load %arg16[%c0_83, %c0_84] : memref<16x128xf32, #tpu.memory_space<vmem>>, vector<16x128xf32>
    tpu.vector_store %arg16[%c0_83, %c0_84], %222 {strides = array<i32>} : memref<16x128xf32, #tpu.memory_space<vmem>>, vector<16x128xf32>,
    return
  }
  func.func @transform_0(%arg0: i32) -> (i32, i32) {
    %c0_i32 = arith.constant 0 : i32
    %c0_i32_0 = arith.constant 0 : i32
    %c0_i32_1 = arith.constant 0 : i32
    return %c0_i32, %c0_i32_0 : i32, i32
  }
  func.func @transform_1(%arg0: i32) -> (i32, i32) {
    %c0_i32 = arith.constant 0 : i32
    %c0_i32_0 = arith.constant 0 : i32
    %c0_i32_1 = arith.constant 0 : i32
    return %c0_i32, %c0_i32_0 : i32, i32
  }
  func.func @transform_2(%arg0: i32) -> (i32, i32) {
    %c0_i32 = arith.constant 0 : i32
    %c0_i32_0 = arith.constant 0 : i32
    %c0_i32_1 = arith.constant 0 : i32
    return %c0_i32, %c0_i32_0 : i32, i32
  }
  func.func @transform_3(%arg0: i32) -> (i32, i32) {
    %c0_i32 = arith.constant 0 : i32
    %c0_i32_0 = arith.constant 0 : i32
    %c0_i32_1 = arith.constant 0 : i32
    return %c0_i32, %c0_i32_0 : i32, i32
  }
  func.func @transform_4(%arg0: i32) -> (i32, i32) {
    %c0_i32 = arith.constant 0 : i32
    %c0_i32_0 = arith.constant 0 : i32
    %c0_i32_1 = arith.constant 0 : i32
    return %c0_i32, %c0_i32_0 : i32, i32
  }
  func.func @transform_5(%arg0: i32) -> (i32, i32) {
    %c0_i32 = arith.constant 0 : i32
    %c0_i32_0 = arith.constant 0 : i32
    %c0_i32_1 = arith.constant 0 : i32
    return %c0_i32, %c0_i32_0 : i32, i32
  }
  func.func @transform_6(%arg0: i32) -> (i32, i32) {
    %c0_i32 = arith.constant 0 : i32
    %c0_i32_0 = arith.constant 0 : i32
    %c0_i32_1 = arith.constant 0 : i32
    return %c0_i32, %c0_i32_0 : i32, i32
  }
  func.func @transform_7(%arg0: i32) -> (i32, i32) {
    %c0_i32 = arith.constant 0 : i32
    %c0_i32_0 = arith.constant 0 : i32
    %c0_i32_1 = arith.constant 0 : i32
    return %c0_i32, %c0_i32_0 : i32, i32
  }
  func.func @transform_8(%arg0: i32) -> (i32, i32) {
    %c0_i32 = arith.constant 0 : i32
    %c0_i32_0 = arith.constant 0 : i32
    %c0_i32_1 = arith.constant 0 : i32
    return %c0_i32, %c0_i32_0 : i32, i32
  }
  func.func @transform_9(%arg0: i32) -> (i32, i32) {
    %c0_i32 = arith.constant 0 : i32
    %c0_i32_0 = arith.constant 0 : i32
    %c0_i32_1 = arith.constant 0 : i32
    return %c0_i32, %c0_i32_0 : i32, i32
  }
  func.func @transform_10(%arg0: i32) -> (i32, i32) {
    %c0_i32 = arith.constant 0 : i32
    %c0_i32_0 = arith.constant 0 : i32
    %c0_i32_1 = arith.constant 0 : i32
    return %c0_i32, %c0_i32_0 : i32, i32
  }
  func.func @transform_11(%arg0: i32) -> (i32, i32) {
    %c0_i32 = arith.constant 0 : i32
    %c0_i32_0 = arith.constant 0 : i32
    %c0_i32_1 = arith.constant 0 : i32
    return %c0_i32, %c0_i32_0 : i32, i32
  }
  func.func @transform_12(%arg0: i32) -> (i32, i32) {
    %c0_i32 = arith.constant 0 : i32
    %c0_i32_0 = arith.constant 0 : i32
    %c0_i32_1 = arith.constant 0 : i32
    return %c0_i32, %c0_i32_0 : i32, i32
  }
  func.func @transform_13(%arg0: i32) -> (i32, i32) {
    %c0_i32 = arith.constant 0 : i32
    %c0_i32_0 = arith.constant 0 : i32
    %c0_i32_1 = arith.constant 0 : i32
    return %c0_i32, %c0_i32_0 : i32, i32
  }
  func.func @transform_14(%arg0: i32) -> (i32, i32) {
    %c0_i32 = arith.constant 0 : i32
    %c0_i32_0 = arith.constant 0 : i32
    %c0_i32_1 = arith.constant 0 : i32
    return %c0_i32, %c0_i32_0 : i32, i32
  }
  func.func @transform_15(%arg0: i32) -> (i32, i32) {
    %c0_i32 = arith.constant 0 : i32
    %c0_i32_0 = arith.constant 0 : i32
    %c0_i32_1 = arith.constant 0 : i32
    return %c0_i32, %c0_i32_0 : i32, i32
  }
  func.func @transform_16(%arg0: i32) -> (i32, i32) {
    %c0_i32 = arith.constant 0 : i32
    %c0_i32_0 = arith.constant 0 : i32
    %c0_i32_1 = arith.constant 0 : i32
    return %c0_i32, %c0_i32_0 : i32, i32
  }
}

</mosaic_0001>

<bundles_post_ra>
// kernel: tpu_custom_call.1
= control target key start
LH: loop header
LB: loop body
LE: loop exit
PB: predicated region body
PF: predicated region fallthrough
CT: control target
= control target key end

     0   :  { %s1721_s0 = inlined_call_operand.vmem [shape: f32[16,16], index: 0, kind: input, shape index: {}]   ;;  %s1722_s1 = inlined_call_operand.vmem [shape: f32[16,1], index: 1, kind: input, shape index: {}]   ;;  %s1723_s2 = inlined_call_operand.hbm [shape: bf16[16,16], index: 2, kind: input, shape index: {}]   ;;  %s1724_s3 = inlined_call_operand.hbm [shape: bf16[16,64], index: 3, kind: input, shape index: {}]   ;;  %s1725_s4 = inlined_call_operand.hbm [shape: f32[1,32], index: 4, kind: input, shape index: {}]   ;;  %s1726_s5 = inlined_call_operand.hbm [shape: bf16[32,128], index: 5, kind: input, shape index: {}]   ;;  %s1727_s6 = inlined_call_operand.hbm [shape: f32[1,128], index: 6, kind: input, shape index: {}]   ;;  %s1728_s7 = inlined_call_operand.hbm [shape: f32[2,16], index: 7, kind: input, shape index: {}]   ;;  %s1729_s8 = inlined_call_operand.vmem [shape: bf16[16,64], index: 8, kind: input, shape index: {}]   ;;  %s1730_s9 = inlined_call_operand.hbm [shape: f32[1,64], index: 9, kind: input, shape index: {}]   ;;  %s1731_s10 = inlined_call_operand.hbm [shape: bf16[32,132], index: 10, kind: input, shape index: {}]   ;;  %s1732_s11 = inlined_call_operand.vmem [shape: bf16[4,32], index: 11, kind: input, shape index: {}]   ;;  %s1733_s12 = inlined_call_operand.hbm [shape: bf16[32,64], index: 12, kind: input, shape index: {}]   ;;  %s1734_s13 = inlined_call_operand.vmem [shape: f32[1,64], index: 13, kind: input, shape index: {}]   ;;  %s1735_s14 = inlined_call_operand.hbm [shape: bf16[32,128], index: 14, kind: input, shape index: {}]   ;;  %s1736_s15 = inlined_call_operand.hbm [shape: f32[16,128], index: 15, kind: output, shape index: {0}]   ;;  %s1737_s16 = inlined_call_operand.hbm [shape: f32[16,128], index: 16, kind: output, shape index: {1}]  }
   0x1   :  { %1739 = sst [smem:[#allocation30_spill]] %s1721_s0 }
   0x2   :  { %22 = vsyncpa [#allocation3], 0 }
   0x3   :  { %23 = vsyncpa [#allocation6], 0 }
   0x4   :  { %24 = vsyncpa [#allocation9], 0 }
   0x5   :  { %25 = vsyncpa [#allocation12], 0 }
   0x6   :  { %26 = vsyncpa [#allocation15], 0 }
   0x7   :  { %27 = vsyncpa [#allocation18], 0 }
   0x8   :  { %28 = vsyncpa [#allocation4], 0 }
   0x9   :  { %29 = vsyncpa [#allocation21], 0  ;;  %s51_s23 = sshll.u32 %s1724_s3, 4  ;;  %s1391_s24 = smov [#allocation5]   ;;  %s52_s23 = int_to_ptr.hbm [resolvable:$true] %s51_s23 }
   0xa   :  { %s53_s25 = sshll.u32 %s1391_s24, 4  ;;  %s75_s28 = sshll.u32 %s1726_s5, 4  ;;  %s54_s25 = int_to_ptr.vmem [resolvable:$true] %s53_s25  ;;  %s76_s28 = int_to_ptr.hbm [resolvable:$true] %s75_s28 }
   0xb   :  { %s1392_s29 = smov 64   ;;  %s1393_s30 = smov 4  }
   0xc   :  { %59 = dma.hbm_to_vmem [thread:$0]  %s52_s23, 128, %s54_s25, [#allocation6], %s1392_s29, %s1392_s29, %s1393_s30  }
   0xd   :  { %s1394_s0 = smov [#allocation8]   ;;  %s100_s3 = sshll.u32 %s1728_s7, 4  ;;  %s101_s3 = int_to_ptr.hbm [resolvable:$true] %s100_s3 }
   0xe   :  { %s77_s17 = sshll.u32 %s1394_s0, 4  ;;  %s123_s21 = sshll.u32 %s1731_s10, 4  ;;  %s78_s17 = int_to_ptr.vmem [resolvable:$true] %s77_s17  ;;  %s124_s21 = int_to_ptr.hbm [resolvable:$true] %s123_s21 }
   0xf   :  { %83 = dma.hbm_to_vmem [thread:$0]  %s76_s28, 256, %s78_s17, [#allocation9], %s1392_s29, %s1392_s29, %s1393_s30  }
  0x10   :  { %s1395_s22 = smov [#allocation11]   ;;  %s1396_s23 = smov [#allocation14]  }
  0x11   :  { %s102_s24 = sshll.u32 %s1395_s22, 4  ;;  %s125_s25 = sshll.u32 %s1396_s23, 4  ;;  %s103_s24 = int_to_ptr.vmem [resolvable:$true] %s102_s24  ;;  %s126_s25 = int_to_ptr.vmem [resolvable:$true] %s125_s25 }
  0x12   :  { %105 = dma.hbm_to_vmem [thread:$0]  %s101_s3, 32, %s103_s24, [#allocation12]  }
  0x13   :  { %s1397_s26 = smov 128   ;;  %s1398_s7 = smov 8  }
  0x14   :  { %131 = dma.hbm_to_vmem [thread:$0]  %s124_s21, 512, %s126_s25, [#allocation15], %s1397_s26, %s1397_s26, %s1398_s7  }
  0x15   :  { %s38_s0 = sshll.u32 %s1723_s2, 4  ;;  %s1399_s10 = smov [#allocation2]   ;;  %s39_s0 = int_to_ptr.hbm [resolvable:$true] %s38_s0 }
  0x16   :  { %s40_s17 = sshll.u32 %s1399_s10, 4  ;;  %s65_s3 = sshll.u32 %s1725_s4, 4  ;;  %s41_s17 = int_to_ptr.vmem [resolvable:$true] %s40_s17  ;;  %s66_s3 = int_to_ptr.hbm [resolvable:$true] %s65_s3 }
  0x17   :  { %46 = dma.hbm_to_vmem [thread:$0]  %s39_s0, 128, %s41_s17, [#allocation3], %s1392_s29, %s1392_s29, %s1393_s30  }
  0x18   :  { %s1400_s5 = smov [#allocation7]   ;;  %s89_s24 = sshll.u32 %s1727_s6, 4  ;;  %s90_s24 = int_to_ptr.hbm [resolvable:$true] %s89_s24 }
  0x19   :  { %s67_s20 = sshll.u32 %s1400_s5, 4  ;;  %s113_s25 = sshll.u32 %s1730_s9, 4  ;;  %s68_s20 = int_to_ptr.vmem [resolvable:$true] %s67_s20  ;;  %s114_s25 = int_to_ptr.hbm [resolvable:$true] %s113_s25 }
  0x1a   :  { %70 = dma.hbm_to_vmem [thread:$0]  %s66_s3, 16, %s68_s20, [#allocation6]  }
  0x1b   :  { %s1401_s27 = smov [#allocation10]   ;;  %s1402_s28 = smov [#allocation13]  }
  0x1c   :  { %s91_s4 = sshll.u32 %s1401_s27, 4  ;;  %s115_s0 = sshll.u32 %s1402_s28, 4  ;;  %s92_s4 = int_to_ptr.vmem [resolvable:$true] %s91_s4  ;;  %s116_s0 = int_to_ptr.vmem [resolvable:$true] %s115_s0 }
  0x1d   :  { %94 = dma.hbm_to_vmem [thread:$0]  %s90_s24, 16, %s92_s4, [#allocation9]  }
  0x1e   :  { %s138_s18 = sshll.u32 %s1733_s12, 4  ;;  %s153_s3 = sshll.u32 %s1735_s14, 4  ;;  %s139_s18 = int_to_ptr.hbm [resolvable:$true] %s138_s18  ;;  %s154_s3 = int_to_ptr.hbm [resolvable:$true] %s153_s3 }
  0x1f   :  { %118 = dma.hbm_to_vmem [thread:$0]  %s114_s25, 16, %s116_s0, [#allocation12]  }
  0x20   :  { %s1403_s5 = smov [#allocation16]   ;;  %s1404_s20 = smov [#allocation17]  }
  0x21   :  { %s140_s9 = sshll.u32 %s1403_s5, 4  ;;  %s155_s21 = sshll.u32 %s1404_s20, 4  ;;  %s141_s9 = int_to_ptr.vmem [resolvable:$true] %s140_s9  ;;  %s156_s21 = int_to_ptr.vmem [resolvable:$true] %s155_s21 }
  0x22   :  { %146 = dma.hbm_to_vmem [thread:$0]  %s139_s18, 256, %s141_s9, [#allocation15], %s1392_s29, %s1392_s29, %s1393_s30  }
  0x23   :  { %161 = dma.hbm_to_vmem [thread:$0]  %s154_s3, 256, %s156_s21, [#allocation18], %s1392_s29, %s1392_s29, %s1393_s30  }
  0x24   :  { %1375 = dma.done.wait [#allocation3], 128  }
  0x25   :  { %1376 = vsyncadd [#allocation3], 4294967168 }
  0x26   :  { %1377 = dma.done.wait [#allocation6], 144  }
  0x27   :  { %1378 = vsyncadd [#allocation6], 4294967152 }
  0x28   :  { %1379 = dma.done.wait [#allocation9], 272  }
  0x29   :  { %1380 = vsyncadd [#allocation9], 4294967024 }
  0x2a   :  { %1381 = dma.done.wait [#allocation12], 48  }
  0x2b   :  { %1382 = vsyncadd [#allocation12], 4294967248 }
  0x2c   :  { %1383 = dma.done.wait [#allocation15], 768  }
  0x2d   :  { %1384 = vsyncadd [#allocation15], 4294966528 }
  0x2e   :  { %1385 = dma.done.wait [#allocation18], 256  }
  0x2f   :  { %1386 = vsyncadd [#allocation18], 4294967040  ;;  %v988_v0 = vld [vmem:[#allocation5] sm:$0xff]  ;;  %s1740_s22 = sld [smem:[#allocation30_spill]]  ;;  %vm216_vm0 = vcmask 130048   ;;  %v990_v4 = vld [vmem:[#allocation8 + $0x8] sm:$0xff] }
  0x30   :  { %227 = vmatpush.bf16.msra.mxu0 %v988_v0  ;;  %273 = vmatpush.bf16.msra.mxu1 %v990_v4  ;;  %v989_v5 = vld [vmem:[#allocation8] sm:$0xff]  ;;  %v1037_v7 = vld [vmem:[#allocation7] ss:$0 sm:$0xff]  ;;  %vm263_vm1 = vcmask 261120   ;;  %v1038_v14 = vld [vmem:[#allocation10] ss:$0 sm:$0xff] }
  0x31   :  { %s1405_s2 = smov 127   ;;  %v1406_v19 = vmov 0   ;;  %v206_v34 = vld [vmem:[%s1722_s1] sm:$0xff]  ;;  %v207_v47 = vld [vmem:[%s1722_s1 + $0x8] sm:$0xff]  ;;  %s1407_s1 = smov 96  }
  0x32   :  { %1028 = vset.pattern.permute.xlu2 %v1406_v19  ;;  %1027 = vset.pattern.permute.xlu1 %v1406_v19  ;;  %vm329_vm5 = vcmp.eq.f32.partialorder %v206_v34, 2.0  ;;  %vm330_vm10 = vcmp.eq.f32.partialorder %v207_v47, 2.0  ;;  %v991_v56 = vld [vmem:[%s1729_s8] sm:$0xff]  ;;  %s903_s3 = sshll.u32 %s1737_s16, 4  ;;  %s1413_s5 = smov [#allocation19]   ;;  %s904_s3 = int_to_ptr.hbm [resolvable:$true] %s903_s3 }
  0x33   :  { %1031 = vset.pattern.permute.xlu0 %v1406_v19  ;;  %390 = vmatpush.bf16.msra.mxu2 %v991_v56  ;;  %v1040_v59 = vld [vmem:[#allocation11] ss:$0 sm:$0xff]  ;;  %v1039_v61 = vld [vmem:[#allocation11 + $0x1] ss:$0 sm:$0xff]  ;;  %v994_v19 = vld [vmem:[#allocation14 + $0x14] sm:$0xf] }
  0x34   :  { %274 = vmatpush.bf16.msra.mxu1 %v989_v5  ;;  %s888_s9 = sshll.u32 %s1413_s5, 4  ;;  %s890_s12 = sshll.u32 %s1736_s15, 4  ;;  %s889_s9 = int_to_ptr.vmem [resolvable:$true] %s888_s9  ;;  %s891_s12 = int_to_ptr.hbm [resolvable:$true] %s890_s12 }
  0x35   :  { %v1550_v1 = vld [vmem:[%s1740_s22] sm:$0xff]  ;;  %v1555_v2 = vld [vmem:[%s1740_s22 + $0x8] sm:$0xff] }
  0x36   :  { %v205_v3 = vpack.c.bf16 %v1555_v2, %v1550_v1 }
  0x38   :  { %930 = vmatmul.msk.bf16.vlgmr.msra.gmra.mxu0 %vm216_vm0, %v205_v3 }
  0xb5   :  { %v1560_v6 = vpop.f32.mrf.mxu0 }
  0xb6   :  { %v238_v8 = vadd.f32 %v1037_v7, %v1560_v6 }
  0xb8   :  { %v240_v11 = vmax.f32 %v238_v8, 0.0 }
  0xbd   :  { %v1563_v9 = vpop.f32.mrf.mxu0 }
  0xbe   :  { %v239_v10 = vadd.f32 %v1037_v7, %v1563_v9 }
  0xc0   :  { %v241_v12 = vmax.f32 %v239_v10, 0.0 }
  0xc2   :  { %v242_v13 = vpack.c.bf16 %v241_v12, %v240_v11  ;;  %v1041_v12 = vld [vmem:[#allocation13] ss:$0 sm:$0xff] }
  0xc4   :  { %939 = vmatmul.msk.bf16.vlgmr.msra.gmra.mxu1 %vm263_vm1, %v242_v13 }
 0x141   :  { %v276_v15 = vpop.f32.mrf.mxu1 }
 0x142   :  { %v277_v16 = vadd.f32 %v1038_v14, %v276_v15 }
 0x144   :  { %281 = vst [vmem:[#allocation20] sm:$0xff] %v277_v16  ;;  %285 = vrot.lane.b32.xlu0 %v277_v16, %s1405_s2 }
 0x149   :  { %v278_v17 = vpop.f32.mrf.mxu1 }
 0x14a   :  { %v279_v18 = vadd.f32 %v1038_v14, %v278_v17 }
 0x14c   :  { %282 = vst [vmem:[#allocation20 + $0x8] sm:$0xff] %v279_v18  ;;  %287 = vrot.lane.b32.xlu0 %v279_v18, %s1405_s2 }
 0x1b6   :  { %v286_v20 = vpop.permute.xlu0 %285 }
 0x1b7   :  { %v291_v21 = vsub.f32 %v277_v16, %v286_v20 }
 0x1b9   :  { %v293_v22 = vmul.f32 1.442695, %v291_v21  ;;  %v957_v21 = vld [vmem:[#allocation14 + $0x18] sm:$0xf0] }
 0x1bb   :  { %1043 = vpow2.f32 %v293_v22  ;;  %v960_v22 = vor.u32 %v994_v19, %v957_v21 }
 0x1bd   :  { %459 = vmatpush.bf16.msrb.mxu0 %v960_v22 }
 0x1be   :  { %v288_v23 = vpop.permute.xlu0 %287 }
 0x1bf   :  { %v292_v24 = vsub.f32 %v279_v18, %v288_v23  ;;  %v995_v18 = vld [vmem:[#allocation14 + $0x14] sm:$0xf0]  ;;  %v947_v23 = vld [vmem:[#allocation14] sm:$0xf] }
 0x1c1   :  { %v1044_v25 = vpop.eup %1043  ;;  %v295_v26 = vmul.f32 1.442695, %v292_v24  ;;  %v993_v24 = vld [vmem:[#allocation14 + $0x4] sm:$0xf0] }
 0x1c2   :  { %v297_v27 = vadd.f32 1.0, %v1044_v25  ;;  %v992_v25 = vld [vmem:[#allocation14 + $0x4] sm:$0xf] }
 0x1c3   :  { %1045 = vpow2.f32 %v295_v26  ;;  %v948_v26 = vor.u32 %v993_v24, %v947_v23 }
 0x1c4   :  { %1047 = vrcp.f32 %v297_v27  ;;  %v310_v33 = vand.u32 2147483648, %v297_v27  ;;  %v308_v36 = vand.u32 2147483647, %v297_v27  ;;  %vm304_vm3 = vweird.f32 %v297_v27 }
 0x1c6   :  { %v311_v39 = vor.u32 1.1754944e-38, %v310_v33  ;;  %vm309_vm6 = vcmp.eq.f32.partialorder %v308_v36, 8.507059e+37 }
 0x1c9   :  { %v1046_v28 = vpop.eup %1045 }
 0x1ca   :  { %v1048_v29 = vpop.eup %1047  ;;  %v298_v30 = vadd.f32 1.0, %v1046_v28 }
 0x1cb   :  { %v300_v31 = vmul.f32 %v1048_v29, %v297_v27  ;;  %vm305_vm2 = vweird.f32 %v1048_v29  ;;  %v949_v27 = vld [vmem:[#allocation14 + $0x8] sm:$0xf0] }
 0x1cc   :  { %1049 = vrcp.f32 %v298_v30  ;;  %vm306_vm4 = vmor %vm304_vm3, %vm305_vm2  ;;  %v325_v46 = vand.u32 2147483648, %v298_v30  ;;  %v323_v49 = vand.u32 2147483647, %v298_v30  ;;  %vm319_vm8 = vweird.f32 %v298_v30 }
 0x1cd   :  { %v301_v32 = vsub.f32 1.0, %v300_v31  ;;  %v952_v28 = vor.u32 %v992_v25, %v949_v27 }
 0x1ce   :  { %v326_v51 = vor.u32 1.1754944e-38, %v325_v46  ;;  %vm324_vm11 = vcmp.eq.f32.partialorder %v323_v49, 8.507059e+37  ;;  %v1410_v49 = vmov 2  }
 0x1cf   :  { %v302_v35 = vmul.f32 %v1048_v29, %v301_v32  ;;  %460 = vmatpush.bf16.msrb.mxu0 %v952_v28 }
 0x1d1   :  { %v303_v37 = vadd.f32 %v1048_v29, %v302_v35 }
 0x1d2   :  { %v1050_v38 = vpop.eup %1049 }
 0x1d3   :  { %v307_v40 = vsel %vm306_vm4, %v1048_v29, %v303_v37  ;;  %v315_v41 = vmul.f32 %v1050_v38, %v298_v30  ;;  %vm320_vm7 = vweird.f32 %v1050_v38  ;;  %v1408_v29 = vmov 3  }
 0x1d4   :  { %v312_v42 = vsel %vm309_vm6, %v311_v39, %v307_v40  ;;  %vm321_vm9 = vmor %vm319_vm8, %vm320_vm7 }
 0x1d5   :  { %v331_v43 = vsel %vm329_vm5, %v312_v42, %v206_v34  ;;  %v316_v44 = vsub.f32 1.0, %v315_v41  ;;  %v1409_v42 = vmov 1  }
 0x1d6   :  { %354 = vperm.xlu2 %1028, %v331_v43   ;;  %v333_v45 = vsub.f32 1.0, %v331_v43 }
 0x1d7   :  { %v317_v48 = vmul.f32 %v1050_v38, %v316_v44 }
 0x1d8   :  { %339 = vperm.xlu1 %1027, %v333_v45  }
 0x1d9   :  { %v318_v50 = vadd.f32 %v1050_v38, %v317_v48 }
 0x1db   :  { %v322_v52 = vsel %vm321_vm9, %v1050_v38, %v318_v50  ;;  %v469_v38 = vld [vmem:[%s1732_s11] sm:$0x3]  ;;  %s1411_s11 = smov 32  }
 0x1dc   :  { %v327_v53 = vsel %vm324_vm11, %v326_v51, %v322_v52  ;;  %v1001_v52 = vld [vmem:[#allocation2] sm:$0xff]  }
 0x1dd   :  { %v332_v54 = vsel %vm330_vm10, %v327_v53, %v207_v47 }
 0x1de   :  { %359 = vperm.xlu2 %1028, %v332_v54   ;;  %v334_v55 = vsub.f32 1.0, %v332_v54  ;;  %v1610_v54 = vunpack.c.l.bf16 %v1001_v52 }
 0x1e0   :  { %344 = vperm.xlu1 %1027, %v334_v55   ;;  %vm509_vm13 = vcmp.gt.f32.partialorder %v1610_v54, 0.0 }
 0x1e8   :  { %1029 = vset.pattern.permute.xlu1 %v1408_v29 }
 0x230   :  { %v1576_v57 = vpop.permute.xlu2 %354 }
 0x231   :  { %v363_v4 = vmul.f32 %v1039_v61, %v1576_v57 }
 0x238   :  { %v1581_v62 = vpop.permute.xlu2 %359 }
 0x239   :  { %v364_v5 = vmul.f32 %v1039_v61, %v1581_v62 }
 0x24a   :  { %v1578_v58 = vpop.permute.xlu1 %339 }
 0x24b   :  { %v348_v60 = vmul.f32 %v1040_v59, %v1578_v58 }
 0x24d   :  { %v350_v0 = vadd.f32 %v348_v60, %v1550_v1 }
 0x24f   :  { %v365_v8 = vadd.f32 %v363_v4, %v350_v0 }
 0x252   :  { %v1583_v63 = vpop.permute.xlu1 %344 }
 0x253   :  { %v349_v3 = vmul.f32 %v1040_v59, %v1583_v63 }
 0x255   :  { %v351_v7 = vadd.f32 %v349_v3, %v1555_v2  ;;  %v955_v2 = vld [vmem:[#allocation14 + $0x10] sm:$0xf] }
 0x256   :  { %v956_v20 = vor.u32 %v995_v18, %v955_v2 }
 0x257   :  { %v366_v10 = vadd.f32 %v364_v5, %v351_v7 }
 0x258   :  { %445 = vmatpush.bf16.msra.mxu3 %v956_v20 }
 0x259   :  { %v367_v11 = vpack.c.bf16 %v366_v10, %v365_v8 }
 0x25b   :  { %944 = vmatmul.msk.bf16.vlgmr.msra.gmra.mxu2 %vm216_vm0, %v367_v11 }
 0x25c   :  { %446 = vmatpush.bf16.msra.mxu3 %v948_v26 }
 0x2de   :  { %v392_v13 = vpop.f32.mrf.mxu2 }
 0x2df   :  { %v393_v14 = vadd.f32 %v1041_v12, %v392_v13 }
 0x2e1   :  { %v399_v15 = vmul.f32 %v393_v14, %v1576_v57  ;;  %v397_v31 = vmul.f32 %v393_v14, %v1578_v58 }
 0x2e3   :  { %403 = vrot.lane.b32.xlu0 %v399_v15, %s1407_s1 }
 0x2e6   :  { %v394_v1 = vpop.f32.mrf.mxu2 }
 0x2e7   :  { %v395_v16 = vadd.f32 %v1041_v12, %v394_v1 }
 0x2e9   :  { %v400_v17 = vmul.f32 %v395_v16, %v1581_v62  ;;  %v398_v32 = vmul.f32 %v395_v16, %v1583_v63  ;;  %v1627_v16 = vunpack.c.h.bf16 %v1001_v52 }
 0x2eb   :  { %405 = vrot.lane.b32.xlu1 %v400_v17, %s1407_s1  ;;  %vm510_vm3 = vcmp.gt.f32.partialorder %v1627_v16, 0.0 }
 0x355   :  { %v404_v30 = vpop.permute.xlu0 %403 }
 0x356   :  { %v409_v34 = vadd.f32 %v404_v30, %v397_v31 }
 0x35d   :  { %v406_v33 = vpop.permute.xlu1 %405 }
 0x35e   :  { %v410_v35 = vadd.f32 %v406_v33, %v398_v32 }
 0x360   :  { %v411_v36 = vpack.c.bf16 %v410_v35, %v409_v34 }
 0x362   :  { %961 = vmatmul.msk.bf16.vlgmr.msra.gmra.mxu3 %vm263_vm1, %v411_v36  ;;  %962 = vmatmul.msk.bf16.vlgmr.msrb.gmra.mxu0 %vm263_vm1, %v411_v36  ;;  %v437_v37 = vsel %vm263_vm1, %v411_v36, 0 }
 0x363   :  { %480 = vmatpush.bf16.xpose.msrb.mxu2 %v437_v37 }
 0x36a   :  { %963 = vmatmul.msk.bf16.vlgmr.msrb.gmra.mxu2 %vm263_vm1, %v469_v38 }
 0x3df   :  { %v462_v39 = vpop.f32.mrf.mxu0 }
 0x3e0   :  { %704 = vperm.xlu1 %1029, %v462_v39   ;;  %492 = vperm.xlu2 %1028, %v462_v39  }
 0x3e5   :  { %v448_v40 = vpop.f32.mrf.mxu3 }
 0x3e6   :  { %v467_v43 = vpack.c.bf16 %v448_v40, %v448_v40 }
 0x3e7   :  { %v464_v41 = vpop.f32.mrf.mxu0 }
 0x3e8   :  { %1030 = vset.pattern.permute.xlu1 %v1409_v42  ;;  %1033 = vset.pattern.permute.xlu2 %v1408_v29  ;;  %v592_v47 = vunpack.c.l.b16 %v467_v43 }
 0x3e9   :  { %497 = vperm.xlu0 %1031, %v464_v41   ;;  %543 = vperm.xlu1 %1030, %v462_v39  }
 0x3ea   :  { %708 = vperm.xlu2 %1033, %v464_v41  }
 0x3ed   :  { %v450_v44 = vpop.f32.mrf.mxu3  ;;  %v1604_v45 = vpop.f32.mrf.mxu2 }
 0x3ee   :  { %v468_v46 = vpack.c.bf16 %v450_v44, %v450_v44  ;;  %v500_v53 = vperm.slane %v1604_v45, 0  ;;  %v711_v4 = vperm.slane %v1604_v45, 3  ;;  %v550_v11 = vperm.slane %v1604_v45, 1 }
 0x3ef   :  { %v641_v30 = vperm.slane %v1604_v45, 2 }
 0x3f0   :  { %v593_v48 = vunpack.c.l.b16 %v468_v46 }
 0x3f1   :  { %1032 = vset.pattern.permute.xlu0 %v1410_v49  ;;  %1035 = vset.pattern.permute.xlu1 %v1410_v49 }
 0x3f2   :  { %v1606_v50 = vpack.c.b16 %v593_v48, %v592_v47  ;;  %1034 = vset.pattern.permute.xlu2 %v1409_v42  ;;  %634 = vperm.xlu0 %1032, %v462_v39  }
 0x3f3   :  { %638 = vperm.xlu1 %1035, %v464_v41   ;;  %547 = vperm.xlu2 %1034, %v464_v41  }
 0x3f4   :  { %626 = vmatpush.bf16.msrb.mxu3 %v1606_v50 }
 0x3f5   :  { %v484_v51 = vpop.f32.mrf.mxu2 }
 0x3fa   :  { %1036 = vset.pattern.permute.xlu0 %v1408_v29 }
 0x43a   :  { %v493_v55 = vpop.permute.xlu2 %492 }
 0x43b   :  { %v501_v56 = vadd.f32 %v500_v53, %v493_v55 }
 0x43d   :  { %v505_v59 = vmul.f32 0.2, %v501_v56  ;;  %vm503_vm12 = vcmp.gt.f32.partialorder %v501_v56, 0.0 }
 0x43f   :  { %v507_v60 = vsel %vm503_vm12, %v501_v56, %v505_v59 }
 0x440   :  { %v1615_v61 = vsel %vm509_vm13, %v507_v60, -1e+30 }
 0x441   :  { %v513_v0 = vsel %vm216_vm0, %v1615_v61, -inf }
 0x442   :  { %514 = vmax.xlane.f32.xlu2 %v513_v0 }
 0x444   :  { %v709_v3 = vpop.permute.xlu2 %708 }
 0x445   :  { %v713_v17 = vadd.f32 %v711_v4, %v709_v3 }
 0x447   :  { %v717_v22 = vmul.f32 0.2, %v713_v17  ;;  %vm715_vm5 = vcmp.gt.f32.partialorder %v713_v17, 0.0 }
 0x449   :  { %v719_v33 = vsel %vm715_vm5, %v713_v17, %v717_v22 }
 0x44a   :  { %v721_v38 = vsel %vm510_vm3, %v719_v33, -1e+30 }
 0x44b   :  { %v725_v42 = vsel %vm216_vm0, %v721_v38, -inf }
 0x44d   :  { %v548_v13 = vpop.permute.xlu2 %547 }
 0x44e   :  { %v552_v2 = vadd.f32 %v550_v11, %v548_v13 }
 0x450   :  { %v556_v23 = vmul.f32 0.2, %v552_v2  ;;  %vm554_vm4 = vcmp.gt.f32.partialorder %v552_v2, 0.0 }
 0x452   :  { %v705_v5 = vpop.permute.xlu1 %704  ;;  %v558_v32 = vsel %vm554_vm4, %v552_v2, %v556_v23 }
 0x453   :  { %v712_v7 = vadd.f32 %v711_v4, %v705_v5  ;;  %v560_v37 = vsel %vm510_vm3, %v558_v32, -1e+30 }
 0x454   :  { %v564_v41 = vsel %vm216_vm0, %v560_v37, -inf }
 0x455   :  { %v716_v8 = vmul.f32 0.2, %v712_v7  ;;  %vm714_vm14 = vcmp.gt.f32.partialorder %v712_v7, 0.0 }
 0x457   :  { %v718_v10 = vsel %vm714_vm14, %v712_v7, %v716_v8 }
 0x458   :  { %v1623_v12 = vsel %vm509_vm13, %v718_v10, -1e+30 }
 0x459   :  { %v722_v14 = vsel %vm216_vm0, %v1623_v12, -inf }
 0x45a   :  { %723 = vmax.xlane.f32.xlu0 %v722_v14 }
 0x45b   :  { %v498_v15 = vpop.permute.xlu0 %497  ;;  %v544_v1 = vpop.permute.xlu1 %543 }
 0x45c   :  { %v502_v18 = vadd.f32 %v500_v53, %v498_v15  ;;  %v551_v19 = vadd.f32 %v550_v11, %v544_v1 }
 0x45e   :  { %v506_v20 = vmul.f32 0.2, %v502_v18  ;;  %v555_v21 = vmul.f32 0.2, %v551_v19  ;;  %vm504_vm15 = vcmp.gt.f32.partialorder %v502_v18, 0.0  ;;  %vm553_vm2 = vcmp.gt.f32.partialorder %v551_v19, 0.0 }
 0x460   :  { %v508_v24 = vsel %vm504_vm15, %v502_v18, %v506_v20  ;;  %v557_v25 = vsel %vm553_vm2, %v551_v19, %v555_v21 }
 0x461   :  { %v512_v26 = vsel %vm510_vm3, %v508_v24, -1e+30  ;;  %v559_v27 = vsel %vm509_vm13, %v557_v25, -1e+30 }
 0x462   :  { %v516_v28 = vsel %vm216_vm0, %v512_v26, -inf  ;;  %v561_v29 = vsel %vm216_vm0, %v559_v27, -inf }
 0x463   :  { %517 = vmax.xlane.f32.xlu1 %v516_v28  ;;  %562 = vmax.xlane.f32.xlu2 %v561_v29 }
 0x464   :  { %v635_v31 = vpop.permute.xlu0 %634 }
 0x465   :  { %v642_v34 = vadd.f32 %v641_v30, %v635_v31  ;;  %v639_v35 = vpop.permute.xlu1 %638 }
 0x466   :  { %v643_v36 = vadd.f32 %v641_v30, %v639_v35 }
 0x467   :  { %v646_v39 = vmul.f32 0.2, %v642_v34  ;;  %vm644_vm7 = vcmp.gt.f32.partialorder %v642_v34, 0.0 }
 0x468   :  { %v647_v40 = vmul.f32 0.2, %v643_v36  ;;  %vm645_vm6 = vcmp.gt.f32.partialorder %v643_v36, 0.0 }
 0x469   :  { %v648_v46 = vsel %vm644_vm7, %v642_v34, %v646_v39 }
 0x46a   :  { %v649_v43 = vsel %vm645_vm6, %v643_v36, %v647_v40  ;;  %v650_v47 = vsel %vm509_vm13, %v648_v46, -1e+30 }
 0x46b   :  { %565 = vmax.xlane.f32.xlu1 %v564_v41  ;;  %726 = vmax.xlane.f32.xlu2 %v725_v42  ;;  %v651_v44 = vsel %vm510_vm3, %v649_v43, -1e+30  ;;  %v652_v48 = vsel %vm216_vm0, %v650_v47, -inf }
 0x46c   :  { %v655_v45 = vsel %vm216_vm0, %v651_v44, -inf }
 0x46d   :  { %656 = vmax.xlane.f32.xlu0 %v655_v45 }
 0x473   :  { %653 = vmax.xlane.f32.xlu2 %v652_v48 }
 0x4b5   :  { %v515_v49 = vpop.xlane.xlu2 %514 }
 0x4b6   :  { %v519_v51 = vsub.f32 %v1615_v61, %v515_v49 }
 0x4b8   :  { %v521_v52 = vmul.f32 1.442695, %v519_v51 }
 0x4ba   :  { %1051 = vpow2.f32 %v521_v52 }
 0x4c0   :  { %v1052_v53 = vpop.eup %1051 }
 0x4c1   :  { %v1651_v55 = vmul.f32 %v1052_v53, %v1610_v54 }
 0x4c3   :  { %v527_v56 = vsel %vm216_vm0, %v1651_v55, 0.0 }
 0x4c4   :  { %528 = vadd.xlane.f32.xlu1 %v527_v56 }
 0x4cd   :  { %v724_v59 = vpop.xlane.xlu0 %723 }
 0x4ce   :  { %v728_v60 = vsub.f32 %v1623_v12, %v724_v59 }
 0x4d0   :  { %v730_v0 = vmul.f32 1.442695, %v728_v60 }
 0x4d2   :  { %1053 = vpow2.f32 %v730_v0 }
 0x4d6   :  { %v518_v3 = vpop.xlane.xlu1 %517  ;;  %v563_v4 = vpop.xlane.xlu2 %562 }
 0x4d7   :  { %v567_v5 = vsub.f32 %v559_v27, %v563_v4  ;;  %v520_v61 = vsub.f32 %v512_v26, %v518_v3 }
 0x4d8   :  { %v1054_v7 = vpop.eup %1053 }
 0x4d9   :  { %v569_v8 = vmul.f32 1.442695, %v567_v5  ;;  %v1657_v10 = vmul.f32 %v1054_v7, %v1610_v54  ;;  %v523_v13 = vmul.f32 1.442695, %v520_v61 }
 0x4db   :  { %v736_v11 = vsel %vm216_vm0, %v1657_v10, 0.0  ;;  %1055 = vpow2.f32 %v569_v8 }
 0x4dc   :  { %737 = vadd.xlane.f32.xlu0 %v736_v11  ;;  %1057 = vpow2.f32 %v523_v13 }
 0x4de   :  { %v566_v14 = vpop.xlane.xlu1 %565  ;;  %v727_v15 = vpop.xlane.xlu2 %726 }
 0x4df   :  { %v568_v12 = vsub.f32 %v560_v37, %v566_v14  ;;  %v729_v24 = vsub.f32 %v721_v38, %v727_v15 }
 0x4e0   :  { %v657_v1 = vpop.xlane.xlu0 %656 }
 0x4e1   :  { %v571_v17 = vmul.f32 1.442695, %v568_v12  ;;  %v659_v2 = vsub.f32 %v651_v44, %v657_v1  ;;  %v1056_v18 = vpop.eup %1055  ;;  %v732_v30 = vmul.f32 1.442695, %v729_v24 }
 0x4e2   :  { %v1662_v19 = vmul.f32 %v1056_v18, %v1610_v54  ;;  %v1058_v22 = vpop.eup %1057 }
 0x4e3   :  { %1059 = vpow2.f32 %v571_v17  ;;  %v662_v20 = vmul.f32 1.442695, %v659_v2  ;;  %v526_v28 = vmul.f32 %v1058_v22, %v1627_v16 }
 0x4e4   :  { %v575_v21 = vsel %vm216_vm0, %v1662_v19, 0.0 }
 0x4e5   :  { %576 = vadd.xlane.f32.xlu2 %v575_v21  ;;  %1061 = vpow2.f32 %v662_v20  ;;  %v530_v32 = vsel %vm216_vm0, %v526_v28, 0.0 }
 0x4e6   :  { %v654_v23 = vpop.xlane.xlu2 %653 }
 0x4e7   :  { %v658_v25 = vsub.f32 %v650_v47, %v654_v23 }
 0x4e9   :  { %v1060_v26 = vpop.eup %1059  ;;  %v660_v27 = vmul.f32 1.442695, %v658_v25 }
 0x4ea   :  { %v1668_v29 = vmul.f32 %v1060_v26, %v1627_v16 }
 0x4eb   :  { %1063 = vpow2.f32 %v660_v27  ;;  %v1062_v33 = vpop.eup %1061 }
 0x4ec   :  { %v578_v31 = vsel %vm216_vm0, %v1668_v29, 0.0  ;;  %1065 = vpow2.f32 %v732_v30  ;;  %v665_v35 = vmul.f32 %v1062_v33, %v1627_v16 }
 0x4ed   :  { %579 = vadd.xlane.f32.xlu0 %v578_v31  ;;  %531 = vadd.xlane.f32.xlu2 %v530_v32 }
 0x4ee   :  { %v669_v39 = vsel %vm216_vm0, %v665_v35, 0.0 }
 0x4f1   :  { %v1064_v34 = vpop.eup %1063 }
 0x4f2   :  { %v664_v36 = vmul.f32 %v1064_v34, %v1610_v54  ;;  %v1066_v38 = vpop.eup %1065  ;;  %v997_v34 = vld [vmem:[#allocation16 + $0x8] sm:$0xff] }
 0x4f3   :  { %v735_v40 = vmul.f32 %v1066_v38, %v1627_v16 }
 0x4f4   :  { %v666_v37 = vsel %vm216_vm0, %v664_v36, 0.0 }
 0x4f5   :  { %667 = vadd.xlane.f32.xlu1 %v666_v37  ;;  %670 = vadd.xlane.f32.xlu2 %v669_v39  ;;  %v739_v41 = vsel %vm216_vm0, %v735_v40, 0.0 }
 0x4fd   :  { %740 = vadd.xlane.f32.xlu1 %v739_v41 }
 0x501   :  { %751 = vrot.lane.b32.xlu0 %v1606_v50, %s1411_s11 }
 0x50d   :  { %681 = vrot.lane.b32.xlu2 %v1606_v50, %s1392_s29 }
 0x516   :  { %595 = vrot.lane.b32.xlu1 %v1606_v50, %s1407_s1 }
 0x537   :  { %v529_v54 = vpop.xlane.xlu1 %528 }
 0x538   :  { %v533_v43 = vmax.f32 %v529_v54, 1e-30 }
 0x53a   :  { %1067 = vrcp.f32 %v533_v43 }
 0x540   :  { %v1068_v46 = vpop.eup %1067 }
 0x541   :  { %v537_v48 = vmul.f32 0.25, %v1068_v46 }
 0x543   :  { %v539_v50 = vmul.f32 %v537_v48, %v1651_v55 }
 0x54f   :  { %v738_v16 = vpop.xlane.xlu0 %737 }
 0x550   :  { %v742_v56 = vmax.f32 %v738_v16, 1e-30 }
 0x558   :  { %v577_v42 = vpop.xlane.xlu2 %576 }
 0x559   :  { %v581_v17 = vmax.f32 %v577_v42, 1e-30 }
 0x560   :  { %v532_v44 = vpop.xlane.xlu2 %531  ;;  %v580_v59 = vpop.xlane.xlu0 %579 }
 0x561   :  { %v534_v45 = vmax.f32 %v532_v44, 1e-30  ;;  %v582_v1 = vmax.f32 %v580_v59, 1e-30  ;;  %v1042_v59 = vld [vmem:[%s1734_s13] ss:$0 sm:$0xff] }
 0x562   :  { %s1412_s13 = smov [#allocation20]  }
 0x563   :  { %1069 = vrcp.f32 %v534_v45  ;;  %s901_s18 = sshll.u32 %s1412_s13, 4  ;;  %s902_s18 = int_to_ptr.vmem [resolvable:$true] %s901_s18 }
 0x564   :  { %909 = dma.vmem_to_hbm [thread:$0]  %s902_s18, 256, %s904_s3, [#allocation21], %s1397_s26, %s1397_s26, %s1398_s7  }
 0x568   :  { %v668_v47 = vpop.xlane.xlu1 %667  ;;  %v671_v51 = vpop.xlane.xlu2 %670 }
 0x569   :  { %v672_v49 = vmax.f32 %v668_v47, 1e-30  ;;  %v1070_v52 = vpop.eup %1069  ;;  %v673_v53 = vmax.f32 %v671_v51, 1e-30 }
 0x56a   :  { %v538_v60 = vmul.f32 0.25, %v1070_v52 }
 0x56b   :  { %1071 = vrcp.f32 %v672_v49 }
 0x56c   :  { %1073 = vrcp.f32 %v673_v53  ;;  %v540_v0 = vmul.f32 %v538_v60, %v526_v28 }
 0x56d   :  { %1075 = vrcp.f32 %v742_v56 }
 0x56e   :  { %v541_v3 = vpack.c.bf16 %v540_v0, %v539_v50 }
 0x570   :  { %v741_v4 = vpop.xlane.xlu1 %740  ;;  %965 = vmatmul.msk.bf16.vlgmr.msrb.gmra.mxu3 %vm216_vm0, %v541_v3  ;;  %v682_v61 = vpop.permute.xlu2 %681 }
 0x571   :  { %v1072_v5 = vpop.eup %1071  ;;  %v743_v7 = vmax.f32 %v741_v4, 1e-30  ;;  %694 = vmatpush.bf16.msra.mxu0 %v682_v61 }
 0x572   :  { %v1074_v8 = vpop.eup %1073  ;;  %v676_v11 = vmul.f32 0.25, %v1072_v5 }
 0x573   :  { %v677_v13 = vmul.f32 0.25, %v1074_v8  ;;  %1077 = vrcp.f32 %v743_v7  ;;  %v752_v14 = vpop.permute.xlu0 %751  ;;  %v1076_v12 = vpop.eup %1075 }
 0x574   :  { %v678_v15 = vmul.f32 %v676_v11, %v664_v36  ;;  %764 = vmatpush.bf16.msra.mxu2 %v752_v14  ;;  %v746_v18 = vmul.f32 0.25, %v1076_v12  ;;  %1079 = vrcp.f32 %v582_v1 }
 0x575   :  { %v679_v55 = vmul.f32 %v677_v13, %v665_v35  ;;  %1081 = vrcp.f32 %v581_v17 }
 0x576   :  { %v748_v22 = vmul.f32 %v746_v18, %v1657_v10  ;;  %v996_v10 = vld [vmem:[#allocation16] sm:$0xff] }
 0x577   :  { %v680_v2 = vpack.c.bf16 %v679_v55, %v678_v15  ;;  %v998_v15 = vld [vmem:[#allocation17] sm:$0xff] }
 0x579   :  { %v1078_v20 = vpop.eup %1077  ;;  %966 = vmatmul.msk.bf16.vlgmr.msra.gmra.mxu0 %vm216_vm0, %v680_v2 }
 0x57a   :  { %v747_v21 = vmul.f32 0.25, %v1078_v20  ;;  %v1080_v25 = vpop.eup %1079 }
 0x57b   :  { %v1082_v26 = vpop.eup %1081  ;;  %v586_v27 = vmul.f32 0.25, %v1080_v25 }
 0x57c   :  { %v749_v23 = vmul.f32 %v747_v21, %v735_v40  ;;  %v585_v28 = vmul.f32 0.25, %v1082_v26 }
 0x57d   :  { %v588_v30 = vmul.f32 %v586_v27, %v1668_v29 }
 0x57e   :  { %v750_v24 = vpack.c.bf16 %v749_v23, %v748_v22  ;;  %v587_v31 = vmul.f32 %v585_v28, %v1662_v19 }
 0x580   :  { %967 = vmatmul.msk.bf16.vlgmr.msra.gmra.mxu2 %vm216_vm0, %v750_v24  ;;  %v589_v33 = vpack.c.bf16 %v588_v30, %v587_v31 }
 0x588   :  { %v596_v32 = vpop.permute.xlu1 %595 }
 0x589   :  { %608 = vmatpush.bf16.msrb.mxu1 %v596_v32 }
 0x58c   :  { %964 = vmatmul.msk.bf16.vlgmr.msrb.gmra.mxu1 %vm216_vm0, %v589_v33 }
 0x58d   :  { %813 = vmatpush.bf16.msra.mxu1 %v997_v34 }
 0x591   :  { %814 = vmatpush.bf16.msra.mxu1 %v996_v10 }
 0x5f3   :  { %v628_v35 = vpop.f32.mrf.mxu3 }
 0x5f6   :  { %v696_v36 = vpop.f32.mrf.mxu0 }
 0x5fb   :  { %v630_v54 = vpop.f32.mrf.mxu3 }
 0x5fe   :  { %v698_v43 = vpop.f32.mrf.mxu0 }
 0x603   :  { %v766_v39 = vpop.f32.mrf.mxu2 }
 0x609   :  { %v610_v37 = vpop.f32.mrf.mxu1 }
 0x60a   :  { %v629_v38 = vadd.f32 %v628_v35, %v610_v37 }
 0x60b   :  { %v768_v45 = vpop.f32.mrf.mxu2 }
 0x60c   :  { %v701_v40 = vadd.f32 %v696_v36, %v629_v38 }
 0x60e   :  { %v771_v41 = vadd.f32 %v766_v39, %v701_v40 }
 0x610   :  { %v775_v42 = vmul.f32 1.442695, %v771_v41  ;;  %vm773_vm0 = vcmp.gt.f32.partialorder %v771_v41, 0.0 }
 0x611   :  { %v612_v29 = vpop.f32.mrf.mxu1 }
 0x612   :  { %v631_v19 = vadd.f32 %v630_v54, %v612_v29  ;;  %1083 = vpow2.f32 %v775_v42 }
 0x614   :  { %v702_v44 = vadd.f32 %v698_v43, %v631_v19 }
 0x616   :  { %v772_v16 = vadd.f32 %v768_v45, %v702_v44 }
 0x618   :  { %v777_v46 = vmul.f32 1.442695, %v772_v16  ;;  %v1084_v47 = vpop.eup %1083  ;;  %vm774_vm8 = vcmp.gt.f32.partialorder %v772_v16, 0.0 }
 0x619   :  { %v968_v48 = vadd.f32 -1.0, %v1084_v47 }
 0x61a   :  { %1085 = vpow2.f32 %v777_v46 }
 0x61b   :  { %v781_v52 = vsel %vm773_vm0, %v771_v41, %v968_v48 }
 0x620   :  { %v1086_v49 = vpop.eup %1085 }
 0x621   :  { %v969_v51 = vadd.f32 -1.0, %v1086_v49 }
 0x623   :  { %v782_v53 = vsel %vm774_vm8, %v772_v16, %v969_v51 }
 0x624   :  { %v783_v56 = vpack.c.bf16 %v782_v53, %v781_v52 }
 0x626   :  { %978 = vmatmul.msk.bf16.vlgmr.msra.gmra.mxu1 %vm263_vm1, %v783_v56 }
 0x6a3   :  { %v816_v60 = vpop.f32.mrf.mxu1 }
 0x6a4   :  { %v817_v50 = vadd.f32 %v1042_v59, %v816_v60 }
 0x6a6   :  { %v823_v0 = vmul.f32 %v817_v50, %v1576_v57  ;;  %v821_v7 = vmul.f32 %v817_v50, %v1578_v58  ;;  %v999_v57 = vld [vmem:[#allocation17 + $0x8] sm:$0xff] }
 0x6a7   :  { %874 = vmatpush.bf16.msra.mxu3 %v999_v57 }
 0x6a8   :  { %827 = vrot.lane.b32.xlu0 %v823_v0, %s1407_s1 }
 0x6ab   :  { %v818_v3 = vpop.f32.mrf.mxu1  ;;  %875 = vmatpush.bf16.msra.mxu3 %v998_v15 }
 0x6ac   :  { %v819_v4 = vadd.f32 %v1042_v59, %v818_v3 }
 0x6ae   :  { %v824_v5 = vmul.f32 %v819_v4, %v1581_v62  ;;  %v822_v11 = vmul.f32 %v819_v4, %v1583_v63 }
 0x6b0   :  { %829 = vrot.lane.b32.xlu1 %v824_v5, %s1407_s1 }
 0x71a   :  { %v828_v61 = vpop.permute.xlu0 %827 }
 0x71b   :  { %v833_v8 = vadd.f32 %v828_v61, %v821_v7 }
 0x71d   :  { %837 = vrot.lane.b32.xlu0 %v833_v8, %s1411_s11 }
 0x722   :  { %v830_v13 = vpop.permute.xlu1 %829 }
 0x723   :  { %v834_v14 = vadd.f32 %v830_v13, %v822_v11 }
 0x725   :  { %839 = vrot.lane.b32.xlu2 %v834_v14, %s1411_s11 }
 0x77f   :  { %v840_v12 = vpop.permute.xlu2 %839 }
 0x780   :  { %v844_v1 = vadd.f32 %v840_v12, %v1563_v9 }
 0x78f   :  { %v838_v62 = vpop.permute.xlu0 %837 }
 0x790   :  { %v843_v58 = vadd.f32 %v838_v62, %v1560_v6 }
 0x792   :  { %v845_v55 = vpack.c.bf16 %v844_v1, %v843_v58 }
 0x794   :  { %851 = vrot.lane.b32.xlu1 %v845_v55, %s1407_s1 }
 0x806   :  { %v852_v17 = vpop.permute.xlu1 %851 }
 0x807   :  { %987 = vmatmul.msk.bf16.vlgmr.msra.gmra.mxu3 %vm263_vm1, %v852_v17 }
 0x88a   :  { %v877_v9 = vpop.f32.mrf.mxu3 }
 0x88b   :  { %882 = vst [vmem:[#allocation19] sm:$0xff] %v877_v9 }
 0x892   :  { %v879_v6 = vpop.f32.mrf.mxu3 }
 0x893   :  { %883 = vst [vmem:[#allocation19 + $0x8] sm:$0xff] %v879_v6 }
 0x894   :  { %896 = dma.vmem_to_hbm [thread:$0]  %s889_s9, 256, %s891_s12, [#allocation4], %s1397_s26, %s1397_s26, %s1398_s7  }
 0x895   :  { %1387 = dma.done.wait [#allocation4], 256  }
 0x896   :  { %1388 = vsyncadd [#allocation4], 4294967040 }
 0x897   :  { %1389 = dma.done.wait [#allocation21], 256  }
 0x898   :  { %1390 = vsyncadd [#allocation21], 4294967040 }
 0x899   :  { %918 = vsyncpa [#allocation3], 1 }
 0x89a   :  { %919 = vsyncpa [#allocation6], 1 }
 0x89b   :  { %920 = vsyncpa [#allocation9], 1 }
 0x89c   :  { %921 = vsyncpa [#allocation12], 1 }
 0x89d   :  { %922 = vsyncpa [#allocation15], 1 }
 0x89e   :  { %923 = vsyncpa [#allocation18], 1 }
 0x89f   :  { %924 = vsyncpa [#allocation4], 1 }
 0x8a0   :  { %925 = vsyncpa [#allocation21], 1 }

</bundles_post_ra>
